<compile_context>
chip_gen: v6e
topology: v6e:2x2x1
jax: 0.10.0
libtpu: 0.0.40
codegen_flags: <defaults>
</compile_context>

<pallas_src>
import functools

import numpy as np
import jax
import jax.numpy as jnp
from jax import lax
from jax.experimental import pallas as pl
from jax.experimental.pallas import tpu as pltpu


def idpgan_kernel(x_ref, pt_ref, wqkv_ref, wo_ref, bo_ref, w2d_ref, b2d_ref,
                  out_ref, *, nhead, head_dim, d_model, use_bf16):
    _rows, E = out_ref.shape                 # (bb*L, E)
    bb, C2, L, _ = pt_ref.shape
    hd, D = head_dim, d_model
    mxu = jnp.bfloat16 if use_bf16 else jnp.float32

    # One wide MXU pass for all heads' q, k and v.  w_t is already folded into
    # the q columns of the fused weight by the wrapper.
    x = x_ref[...].astype(mxu)                               # (bb*L, E)
    wqkv = wqkv_ref[...].astype(mxu)                         # (E, 3D)
    qkv = jnp.dot(x, wqkv, preferred_element_type=jnp.float32)   # (bb*L, 3D) f32

    outs = [None] * bb
    for h in range(nhead):
        # Per-head lane slices of the fused projection (1-vreg slices, no MXU).
        q_h = qkv[:, h * hd:(h + 1) * hd]
        k_h = qkv[:, D + h * hd:D + (h + 1) * hd]
        v_h = qkv[:, 2 * D + h * hd:2 * D + (h + 1) * hd]

        if E <= 128:
            # Fold this head's output projection before the O(L^2) matmul
            # (output width E fits one MXU lane tile).
            vo_h = jnp.dot(v_h.astype(mxu), wo_ref[h].astype(mxu),
                           preferred_element_type=jnp.float32)   # (bb*L, E)
            vo_m = vo_h.astype(mxu)

        for b in range(bb):
            r0 = b * L                        # sublane-aligned row slice
            qb = q_h[r0:r0 + L].astype(mxu)
            kb = k_h[r0:r0 + L].astype(mxu)

            # mlp_2d bias for this (batch, head): pure f32 VPU FMAs on (L, L),
            # head never on the lane axis; pt tiles are read here (cheap vld)
            # instead of being hoisted and kept live across the whole unroll.
            bias = b2d_ref[h] + w2d_ref[0, h] * pt_ref[b, 0]
            for c in range(1, C2):
                bias = bias + w2d_ref[c, h] * pt_ref[b, c]

            scores = lax.dot_general(
                qb, kb, (((1,), (1,)), ((), ())),
                preferred_element_type=jnp.float32) + bias       # (L, L) f32

            # f32 softmax; EUP reciprocal + one Newton step (~f32 accurate).
            m = jnp.max(scores, axis=-1, keepdims=True)
            e = jnp.exp(scores - m)
            denom = jnp.sum(e, axis=-1, keepdims=True)
            r = pl.reciprocal(denom, approx=True)
            r = r * (2.0 - denom * r)
            attn = (e * r).astype(mxu)

            if E <= 128:
                contrib = jnp.dot(attn, vo_m[r0:r0 + L],
                                  preferred_element_type=jnp.float32)
            else:
                o_b = jnp.dot(attn, v_h[r0:r0 + L].astype(mxu),
                              preferred_element_type=jnp.float32)
                contrib = jnp.dot(o_b.astype(mxu), wo_ref[h].astype(mxu),
                                  preferred_element_type=jnp.float32)

            outs[b] = contrib if outs[b] is None else outs[b] + contrib

    # Single lane-contiguous slab store, one bo broadcast.
    slab = outs[0] if bb == 1 else jnp.concatenate(outs, axis=0)
    out_ref[...] = slab + bo_ref[...]


def _device_kind():
    try:
        return jax.devices()[0].device_kind.lower()
    except Exception:
        return ""


def _vmem_limit_bytes(bb, L, E, D, C2, H, is_v7):
    """Rough scoped-VMEM requirement for the chosen block sizes."""
    f = 4
    hd = D // H
    io_blocks = 2 * (2 * bb * L * E + bb * C2 * L * L)        # x + out + pt (dbl-buffered)
    weights = 2 * (E * 3 * D + H * hd * E + E)                # dbl-buffered weight slabs
    work = bb * L * (3 * D + 2 * E) + 4 * L * L + bb * L * E  # qkv/vo/acc/scores values
    need = (io_blocks + weights + work) * f
    cap = (48 << 20) if is_v7 else (100 << 20)                # stay under 64 MiB on v7x
    return int(min(cap, max(32 << 20, 2 * need)))


def idpgan_forward(s, p, params, nhead, *, batch_block=None, use_bf16_mxu=True,
                   dp_attn_norm="d_model"):
    """s: (L, B, in_dim) [torch layout], p: (B, L, L, in_dim_2d)."""
    L, B, E = s.shape
    D = params["wq"].shape[1]
    hd = D // nhead
    assert hd * nhead == D
    w_t = 1.0 / np.sqrt(D) if dp_attn_norm == "d_model" else 1.0 / np.sqrt(hd)
    C2 = p.shape[-1]

    kind = _device_kind()
    is_v7 = ("v7" in kind) or ("7x" in kind)
    if batch_block is None:
        # v7x: >= 2 parallel grid steps so both TensorCores get work; v5e/v6e:
        # one big step (single TC, avoid per-step fixed overhead).
        batch_block = B // 2 if (is_v7 and B > 1 and B % 2 == 0) else B
    assert B % batch_block == 0
    n_steps = B // batch_block

    # ---- layout plumbing only (no compute hoisted into the wrapper) ----
    x = jnp.transpose(s, (1, 0, 2)).reshape(B * L, E)               # (B*L, E)
    pt = jnp.transpose(p, (0, 3, 1, 2))                             # (B,C2,L,L)
    # Fused q|k|v projection weight; w_t folded into the q columns while we
    # are already reshuffling weights here.
    wqkv = jnp.concatenate(
        [params["wq"] * w_t, params["wk"], params["wv"]], axis=1)   # (E, 3D)
    wo_h = params["wo"].reshape(nhead, hd, E)                       # (H, hd, E)
    bo = params["bo"].reshape(1, E)
    w2d = params["w2d"]                                             # (C2, H)
    b2d = params["b2d"].reshape(nhead)                              # (H,)

    vmem_limit = _vmem_limit_bytes(batch_block, L, E, D, C2, nhead, is_v7)

    out = pl.pallas_call(
        functools.partial(idpgan_kernel, nhead=nhead, head_dim=hd,
                          d_model=D, use_bf16=use_bf16_mxu),
        out_shape=jax.ShapeDtypeStruct((B * L, E), jnp.float32),
        grid=(n_steps,),
        in_specs=[
            pl.BlockSpec((batch_block * L, E), lambda i: (i, 0)),           # x
            pl.BlockSpec((batch_block, C2, L, L), lambda i: (i, 0, 0, 0)),  # pt
            pl.BlockSpec((E, 3 * D), lambda i: (0, 0)),                     # wqkv
            pl.BlockSpec((nhead, hd, E), lambda i: (0, 0, 0)),              # wo
            pl.BlockSpec((1, E), lambda i: (0, 0)),                         # bo
            pl.BlockSpec(memory_space=pltpu.MemorySpace.SMEM),      # w2d (C2,H)
            pl.BlockSpec(memory_space=pltpu.MemorySpace.SMEM),      # b2d (H,)
        ],
        out_specs=pl.BlockSpec((batch_block * L, E), lambda i: (i, 0)),
        compiler_params=pltpu.CompilerParams(
            dimension_semantics=("parallel",),
            vmem_limit_bytes=vmem_limit),
    )(x, pt, wqkv, wo_h, bo, w2d, b2d)

    return jnp.transpose(out.reshape(B, L, E), (1, 0, 2))   # (L, B, E)


def reference_forward(s, p, params, nhead):
    """Plain-JAX transcription of the PyTorch forward (for validation)."""
    L, B, E = s.shape
    D = params["wq"].shape[1]
    hd = D // nhead
    w_t = 1.0 / np.sqrt(D)
    q = s @ params["wq"]
    k = s @ params["wk"]
    v = s @ params["wv"]
    q = q.reshape(L, B * nhead, hd).transpose(1, 0, 2) * w_t
    k = k.reshape(L, B * nhead, hd).transpose(1, 0, 2)
    v = v.reshape(L, B * nhead, hd).transpose(1, 0, 2)
    dp_aff = jnp.einsum("nld,nmd->nlm", q, k)
    pm = p @ params["w2d"] + params["b2d"][0]                 # (B, L, L, H)
    pm = jnp.transpose(pm, (0, 3, 1, 2)).reshape(B * nhead, L, L)
    attn = jax.nn.softmax(dp_aff + pm, axis=-1)
    s_new = jnp.einsum("nlm,nmd->nld", attn, v)
    s_new = s_new.transpose(1, 0, 2).reshape(L, B, D)
    return s_new @ params["wo"] + params["bo"][0]


if __name__ == "__main__":
    # Small shapes consistent with the module:
    # seq=8, batch=2, in_dim=32, d_model=32, nhead=4 (head_dim=8), in_dim_2d=4
    L, B, E, D, H, C2 = 8, 2, 32, 32, 4, 4

    key = jax.random.PRNGKey(0)
    ks = jax.random.split(key, 9)
    params = {
        "wq":  jax.random.normal(ks[0], (E, D), jnp.float32) * 0.1,
        "wk":  jax.random.normal(ks[1], (E, D), jnp.float32) * 0.1,
        "wv":  jax.random.normal(ks[2], (E, D), jnp.float32) * 0.1,
        "wo":  jax.random.normal(ks[3], (D, E), jnp.float32) * 0.1,
        "bo":  jax.random.normal(ks[4], (1, E), jnp.float32) * 0.1,
        "w2d": jax.random.normal(ks[5], (C2, H), jnp.float32) * 0.1,
        "b2d": jax.random.normal(ks[6], (1, H), jnp.float32) * 0.1,
    }
    s = jax.random.normal(ks[7], (L, B, E), jnp.float32)
    p = jax.random.normal(ks[8], (B, L, L, C2), jnp.float32)

    ref = reference_forward(s, p, params, nhead=H)

    # Default path: bf16 MXU operands, f32 VPU/softmax math.
    out = jax.block_until_ready(idpgan_forward(s, p, params, nhead=H))
    assert out.shape == (L, B, E), out.shape
    np.testing.assert_allclose(np.asarray(out), np.asarray(ref),
                               rtol=2e-2, atol=2e-2)

    # Full-f32 MXU path (flag off): tighter agreement with the reference.
    out_f32 = jax.block_until_ready(
        idpgan_forward(s, p, params, nhead=H, use_bf16_mxu=False))
    np.testing.assert_allclose(np.asarray(out_f32), np.asarray(ref),
                               rtol=1e-2, atol=1e-2)

    print("KERNEL_OK")
</pallas_src>

<mosaic_0001>
module attributes {stable_mosaic.version = 11 : i64} {
  func.func @idpgan_kernel(%arg0: i32, %arg1: memref<16x32xf32, #tpu.memory_space<vmem>>, %arg2: memref<2x4x8x8xf32, #tpu.memory_space<vmem>>, %arg3: memref<32x96xf32, #tpu.memory_space<vmem>>, %arg4: memref<4x8x32xf32, #tpu.memory_space<vmem>>, %arg5: memref<1x32xf32, #tpu.memory_space<vmem>>, %arg6: memref<4x4xf32, #tpu.memory_space<smem>>, %arg7: memref<4xf32, #tpu.memory_space<smem>>, %arg8: memref<16x32xf32, #tpu.memory_space<vmem>>) attributes {dimension_semantics = [#tpu.dimension_semantics<parallel>], iteration_bounds = array<i64: 1>, scalar_prefetch = 0 : i64, scratch_operands = 0 : i64, tpu.core_type = #tpu.core_type<tc>, window_params = [{transform_indices = @transform_0, window_bounds = array<i64: 16, 32>}, {transform_indices = @transform_1, window_bounds = array<i64: 2, 4, 8, 8>}, {pipeline_mode = #tpu.pipeline_mode<synchronous>, transform_indices = @transform_2, window_bounds = array<i64: 32, 96>}, {pipeline_mode = #tpu.pipeline_mode<synchronous>, transform_indices = @transform_3, window_bounds = array<i64: 4, 8, 32>}, {pipeline_mode = #tpu.pipeline_mode<synchronous>, transform_indices = @transform_4, window_bounds = array<i64: 1, 32>}, {transform_indices = @transform_5, window_bounds = array<i64: 4, 4>}, {transform_indices = @transform_6, window_bounds = array<i64: 4>}, {transform_indices = @transform_7, window_bounds = array<i64: 16, 32>}]} {
    %c0 = arith.constant 0 : index
    %c0_0 = arith.constant 0 : index
    %0 = vector.load %arg1[%c0, %c0_0] : memref<16x32xf32, #tpu.memory_space<vmem>>, vector<16x32xf32>
    %1 = arith.truncf %0 : vector<16x32xf32> to vector<16x32xbf16>
    %c0_1 = arith.constant 0 : index
    %c0_2 = arith.constant 0 : index
    %2 = vector.load %arg3[%c0_1, %c0_2] : memref<32x96xf32, #tpu.memory_space<vmem>>, vector<32x96xf32>
    %3 = arith.truncf %2 : vector<32x96xf32> to vector<32x96xbf16>
    %cst = arith.constant dense<0.000000e+00> : vector<16x96xf32>
    %4 = tpu.matmul %1, %3, %cst {dimension_numbers = #tpu.dot_dimension_numbers<[1], [0], [0], [1], [0, 0, 1, 1], [], []>} : vector<16x32xbf16>, vector<32x96xbf16>, vector<16x96xf32> -> vector<16x96xf32>
    %5 = vector.extract_strided_slice %4 {offsets = [0, 0], sizes = [16, 8], strides = [1, 1]} : vector<16x96xf32> to vector<16x8xf32>
    %6 = vector.extract_strided_slice %4 {offsets = [0, 32], sizes = [16, 8], strides = [1, 1]} : vector<16x96xf32> to vector<16x8xf32>
    %7 = vector.extract_strided_slice %4 {offsets = [0, 64], sizes = [16, 8], strides = [1, 1]} : vector<16x96xf32> to vector<16x8xf32>
    %8 = arith.truncf %7 : vector<16x8xf32> to vector<16x8xbf16>
    %c0_3 = arith.constant 0 : index
    %c0_4 = arith.constant 0 : index
    %c0_5 = arith.constant 0 : index
    %9 = vector.load %arg4[%c0_3, %c0_4, %c0_5] : memref<4x8x32xf32, #tpu.memory_space<vmem>>, vector<1x8x32xf32>
    %10 = vector.shape_cast %9 : vector<1x8x32xf32> to vector<8x32xf32>
    %11 = arith.truncf %10 : vector<8x32xf32> to vector<8x32xbf16>
    %cst_6 = arith.constant dense<0.000000e+00> : vector<16x32xf32>
    %12 = tpu.matmul %8, %11, %cst_6 {dimension_numbers = #tpu.dot_dimension_numbers<[1], [0], [0], [1], [0, 0, 1, 1], [], []>} : vector<16x8xbf16>, vector<8x32xbf16>, vector<16x32xf32> -> vector<16x32xf32>
    %13 = arith.truncf %12 : vector<16x32xf32> to vector<16x32xbf16>
    %14 = vector.extract_strided_slice %5 {offsets = [0, 0], sizes = [8, 8], strides = [1, 1]} : vector<16x8xf32> to vector<8x8xf32>
    %15 = arith.truncf %14 : vector<8x8xf32> to vector<8x8xbf16>
    %16 = vector.extract_strided_slice %6 {offsets = [0, 0], sizes = [8, 8], strides = [1, 1]} : vector<16x8xf32> to vector<8x8xf32>
    %17 = arith.truncf %16 : vector<8x8xf32> to vector<8x8xbf16>
    %c0_7 = arith.constant 0 : index
    %18 = memref.load %arg7[%c0_7] : memref<4xf32, #tpu.memory_space<smem>>
    %c0_8 = arith.constant 0 : index
    %c0_9 = arith.constant 0 : index
    %19 = memref.load %arg6[%c0_8, %c0_9] : memref<4x4xf32, #tpu.memory_space<smem>>
    %c0_10 = arith.constant 0 : index
    %c0_11 = arith.constant 0 : index
    %c0_12 = arith.constant 0 : index
    %c0_13 = arith.constant 0 : index
    %20 = vector.load %arg2[%c0_10, %c0_11, %c0_12, %c0_13] : memref<2x4x8x8xf32, #tpu.memory_space<vmem>>, vector<1x1x8x8xf32>
    %21 = vector.shape_cast %20 : vector<1x1x8x8xf32> to vector<8x8xf32>
    %22 = vector.broadcast %19 : f32 to vector<8x8xf32>
    %23 = arith.mulf %22, %21 : vector<8x8xf32>
    %24 = vector.broadcast %18 : f32 to vector<8x8xf32>
    %25 = arith.addf %24, %23 : vector<8x8xf32>
    %c1 = arith.constant 1 : index
    %c0_14 = arith.constant 0 : index
    %26 = memref.load %arg6[%c1, %c0_14] : memref<4x4xf32, #tpu.memory_space<smem>>
    %c0_15 = arith.constant 0 : index
    %c1_16 = arith.constant 1 : index
    %c0_17 = arith.constant 0 : index
    %c0_18 = arith.constant 0 : index
    %27 = vector.load %arg2[%c0_15, %c1_16, %c0_17, %c0_18] : memref<2x4x8x8xf32, #tpu.memory_space<vmem>>, vector<1x1x8x8xf32>
    %28 = vector.shape_cast %27 : vector<1x1x8x8xf32> to vector<8x8xf32>
    %29 = vector.broadcast %26 : f32 to vector<8x8xf32>
    %30 = arith.mulf %29, %28 : vector<8x8xf32>
    %31 = arith.addf %25, %30 : vector<8x8xf32>
    %c2 = arith.constant 2 : index
    %c0_19 = arith.constant 0 : index
    %32 = memref.load %arg6[%c2, %c0_19] : memref<4x4xf32, #tpu.memory_space<smem>>
    %c0_20 = arith.constant 0 : index
    %c2_21 = arith.constant 2 : index
    %c0_22 = arith.constant 0 : index
    %c0_23 = arith.constant 0 : index
    %33 = vector.load %arg2[%c0_20, %c2_21, %c0_22, %c0_23] : memref<2x4x8x8xf32, #tpu.memory_space<vmem>>, vector<1x1x8x8xf32>
    %34 = vector.shape_cast %33 : vector<1x1x8x8xf32> to vector<8x8xf32>
    %35 = vector.broadcast %32 : f32 to vector<8x8xf32>
    %36 = arith.mulf %35, %34 : vector<8x8xf32>
    %37 = arith.addf %31, %36 : vector<8x8xf32>
    %c3 = arith.constant 3 : index
    %c0_24 = arith.constant 0 : index
    %38 = memref.load %arg6[%c3, %c0_24] : memref<4x4xf32, #tpu.memory_space<smem>>
    %c0_25 = arith.constant 0 : index
    %c3_26 = arith.constant 3 : index
    %c0_27 = arith.constant 0 : index
    %c0_28 = arith.constant 0 : index
    %39 = vector.load %arg2[%c0_25, %c3_26, %c0_27, %c0_28] : memref<2x4x8x8xf32, #tpu.memory_space<vmem>>, vector<1x1x8x8xf32>
    %40 = vector.shape_cast %39 : vector<1x1x8x8xf32> to vector<8x8xf32>
    %41 = vector.broadcast %38 : f32 to vector<8x8xf32>
    %42 = arith.mulf %41, %40 : vector<8x8xf32>
    %43 = arith.addf %37, %42 : vector<8x8xf32>
    %cst_29 = arith.constant dense<0.000000e+00> : vector<8x8xf32>
    %44 = tpu.matmul %15, %17, %cst_29 {dimension_numbers = #tpu.dot_dimension_numbers<[1], [1], [0], [0], [0, 0, 1, 0], [], []>} : vector<8x8xbf16>, vector<8x8xbf16>, vector<8x8xf32> -> vector<8x8xf32>
    %45 = arith.addf %44, %43 : vector<8x8xf32>
    %cst_30 = arith.constant dense<0xFF800000> : vector<8xf32>
    %46 = vector.multi_reduction <maximumf>, %45, %cst_30 [1] : vector<8x8xf32> to vector<8xf32>
    %47 = vector.shape_cast %46 : vector<8xf32> to vector<8x1xf32>
    %48 = vector.broadcast %47 : vector<8x1xf32> to vector<8x8xf32>
    %49 = arith.subf %45, %48 : vector<8x8xf32>
    %50 = math.exp %49 : vector<8x8xf32>
    %cst_31 = arith.constant dense<0.000000e+00> : vector<8xf32>
    %51 = vector.multi_reduction <add>, %50, %cst_31 [1] : vector<8x8xf32> to vector<8xf32>
    %52 = vector.shape_cast %51 : vector<8xf32> to vector<8x1xf32>
    %53 = tpu.reciprocal %52 {approx = true} : vector<8x1xf32> -> vector<8x1xf32>
    %54 = arith.mulf %52, %53 : vector<8x1xf32>
    %cst_32 = arith.constant 2.000000e+00 : f32
    %55 = vector.broadcast %cst_32 : f32 to vector<8x1xf32>
    %56 = arith.subf %55, %54 : vector<8x1xf32>
    %57 = arith.mulf %53, %56 : vector<8x1xf32>
    %58 = vector.broadcast %57 : vector<8x1xf32> to vector<8x8xf32>
    %59 = arith.mulf %50, %58 : vector<8x8xf32>
    %60 = arith.truncf %59 : vector<8x8xf32> to vector<8x8xbf16>
    %61 = vector.extract_strided_slice %13 {offsets = [0, 0], sizes = [8, 32], strides = [1, 1]} : vector<16x32xbf16> to vector<8x32xbf16>
    %cst_33 = arith.constant dense<0.000000e+00> : vector<8x32xf32>
    %62 = tpu.matmul %60, %61, %cst_33 {dimension_numbers = #tpu.dot_dimension_numbers<[1], [0], [0], [1], [0, 0, 1, 1], [], []>} : vector<8x8xbf16>, vector<8x32xbf16>, vector<8x32xf32> -> vector<8x32xf32>
    %63 = vector.extract_strided_slice %5 {offsets = [8, 0], sizes = [8, 8], strides = [1, 1]} : vector<16x8xf32> to vector<8x8xf32>
    %64 = arith.truncf %63 : vector<8x8xf32> to vector<8x8xbf16>
    %65 = vector.extract_strided_slice %6 {offsets = [8, 0], sizes = [8, 8], strides = [1, 1]} : vector<16x8xf32> to vector<8x8xf32>
    %66 = arith.truncf %65 : vector<8x8xf32> to vector<8x8xbf16>
    %c0_34 = arith.constant 0 : index
    %67 = memref.load %arg7[%c0_34] : memref<4xf32, #tpu.memory_space<smem>>
    %c0_35 = arith.constant 0 : index
    %c0_36 = arith.constant 0 : index
    %68 = memref.load %arg6[%c0_35, %c0_36] : memref<4x4xf32, #tpu.memory_space<smem>>
    %c1_37 = arith.constant 1 : index
    %c0_38 = arith.constant 0 : index
    %c0_39 = arith.constant 0 : index
    %c0_40 = arith.constant 0 : index
    %69 = vector.load %arg2[%c1_37, %c0_38, %c0_39, %c0_40] : memref<2x4x8x8xf32, #tpu.memory_space<vmem>>, vector<1x1x8x8xf32>
    %70 = vector.shape_cast %69 : vector<1x1x8x8xf32> to vector<8x8xf32>
    %71 = vector.broadcast %68 : f32 to vector<8x8xf32>
    %72 = arith.mulf %71, %70 : vector<8x8xf32>
    %73 = vector.broadcast %67 : f32 to vector<8x8xf32>
    %74 = arith.addf %73, %72 : vector<8x8xf32>
    %c1_41 = arith.constant 1 : index
    %c0_42 = arith.constant 0 : index
    %75 = memref.load %arg6[%c1_41, %c0_42] : memref<4x4xf32, #tpu.memory_space<smem>>
    %c1_43 = arith.constant 1 : index
    %c1_44 = arith.constant 1 : index
    %c0_45 = arith.constant 0 : index
    %c0_46 = arith.constant 0 : index
    %76 = vector.load %arg2[%c1_43, %c1_44, %c0_45, %c0_46] : memref<2x4x8x8xf32, #tpu.memory_space<vmem>>, vector<1x1x8x8xf32>
    %77 = vector.shape_cast %76 : vector<1x1x8x8xf32> to vector<8x8xf32>
    %78 = vector.broadcast %75 : f32 to vector<8x8xf32>
    %79 = arith.mulf %78, %77 : vector<8x8xf32>
    %80 = arith.addf %74, %79 : vector<8x8xf32>
    %c2_47 = arith.constant 2 : index
    %c0_48 = arith.constant 0 : index
    %81 = memref.load %arg6[%c2_47, %c0_48] : memref<4x4xf32, #tpu.memory_space<smem>>
    %c1_49 = arith.constant 1 : index
    %c2_50 = arith.constant 2 : index
    %c0_51 = arith.constant 0 : index
    %c0_52 = arith.constant 0 : index
    %82 = vector.load %arg2[%c1_49, %c2_50, %c0_51, %c0_52] : memref<2x4x8x8xf32, #tpu.memory_space<vmem>>, vector<1x1x8x8xf32>
    %83 = vector.shape_cast %82 : vector<1x1x8x8xf32> to vector<8x8xf32>
    %84 = vector.broadcast %81 : f32 to vector<8x8xf32>
    %85 = arith.mulf %84, %83 : vector<8x8xf32>
    %86 = arith.addf %80, %85 : vector<8x8xf32>
    %c3_53 = arith.constant 3 : index
    %c0_54 = arith.constant 0 : index
    %87 = memref.load %arg6[%c3_53, %c0_54] : memref<4x4xf32, #tpu.memory_space<smem>>
    %c1_55 = arith.constant 1 : index
    %c3_56 = arith.constant 3 : index
    %c0_57 = arith.constant 0 : index
    %c0_58 = arith.constant 0 : index
    %88 = vector.load %arg2[%c1_55, %c3_56, %c0_57, %c0_58] : memref<2x4x8x8xf32, #tpu.memory_space<vmem>>, vector<1x1x8x8xf32>
    %89 = vector.shape_cast %88 : vector<1x1x8x8xf32> to vector<8x8xf32>
    %90 = vector.broadcast %87 : f32 to vector<8x8xf32>
    %91 = arith.mulf %90, %89 : vector<8x8xf32>
    %92 = arith.addf %86, %91 : vector<8x8xf32>
    %cst_59 = arith.constant dense<0.000000e+00> : vector<8x8xf32>
    %93 = tpu.matmul %64, %66, %cst_59 {dimension_numbers = #tpu.dot_dimension_numbers<[1], [1], [0], [0], [0, 0, 1, 0], [], []>} : vector<8x8xbf16>, vector<8x8xbf16>, vector<8x8xf32> -> vector<8x8xf32>
    %94 = arith.addf %93, %92 : vector<8x8xf32>
    %cst_60 = arith.constant dense<0xFF800000> : vector<8xf32>
    %95 = vector.multi_reduction <maximumf>, %94, %cst_60 [1] : vector<8x8xf32> to vector<8xf32>
    %96 = vector.shape_cast %95 : vector<8xf32> to vector<8x1xf32>
    %97 = vector.broadcast %96 : vector<8x1xf32> to vector<8x8xf32>
    %98 = arith.subf %94, %97 : vector<8x8xf32>
    %99 = math.exp %98 : vector<8x8xf32>
    %cst_61 = arith.constant dense<0.000000e+00> : vector<8xf32>
    %100 = vector.multi_reduction <add>, %99, %cst_61 [1] : vector<8x8xf32> to vector<8xf32>
    %101 = vector.shape_cast %100 : vector<8xf32> to vector<8x1xf32>
    %102 = tpu.reciprocal %101 {approx = true} : vector<8x1xf32> -> vector<8x1xf32>
    %103 = arith.mulf %101, %102 : vector<8x1xf32>
    %cst_62 = arith.constant 2.000000e+00 : f32
    %104 = vector.broadcast %cst_62 : f32 to vector<8x1xf32>
    %105 = arith.subf %104, %103 : vector<8x1xf32>
    %106 = arith.mulf %102, %105 : vector<8x1xf32>
    %107 = vector.broadcast %106 : vector<8x1xf32> to vector<8x8xf32>
    %108 = arith.mulf %99, %107 : vector<8x8xf32>
    %109 = arith.truncf %108 : vector<8x8xf32> to vector<8x8xbf16>
    %110 = vector.extract_strided_slice %13 {offsets = [8, 0], sizes = [8, 32], strides = [1, 1]} : vector<16x32xbf16> to vector<8x32xbf16>
    %cst_63 = arith.constant dense<0.000000e+00> : vector<8x32xf32>
    %111 = tpu.matmul %109, %110, %cst_63 {dimension_numbers = #tpu.dot_dimension_numbers<[1], [0], [0], [1], [0, 0, 1, 1], [], []>} : vector<8x8xbf16>, vector<8x32xbf16>, vector<8x32xf32> -> vector<8x32xf32>
    %112 = vector.extract_strided_slice %4 {offsets = [0, 8], sizes = [16, 8], strides = [1, 1]} : vector<16x96xf32> to vector<16x8xf32>
    %113 = vector.extract_strided_slice %4 {offsets = [0, 40], sizes = [16, 8], strides = [1, 1]} : vector<16x96xf32> to vector<16x8xf32>
    %114 = vector.extract_strided_slice %4 {offsets = [0, 72], sizes = [16, 8], strides = [1, 1]} : vector<16x96xf32> to vector<16x8xf32>
    %115 = arith.truncf %114 : vector<16x8xf32> to vector<16x8xbf16>
    %c1_64 = arith.constant 1 : index
    %c0_65 = arith.constant 0 : index
    %c0_66 = arith.constant 0 : index
    %116 = vector.load %arg4[%c1_64, %c0_65, %c0_66] : memref<4x8x32xf32, #tpu.memory_space<vmem>>, vector<1x8x32xf32>
    %117 = vector.shape_cast %116 : vector<1x8x32xf32> to vector<8x32xf32>
    %118 = arith.truncf %117 : vector<8x32xf32> to vector<8x32xbf16>
    %cst_67 = arith.constant dense<0.000000e+00> : vector<16x32xf32>
    %119 = tpu.matmul %115, %118, %cst_67 {dimension_numbers = #tpu.dot_dimension_numbers<[1], [0], [0], [1], [0, 0, 1, 1], [], []>} : vector<16x8xbf16>, vector<8x32xbf16>, vector<16x32xf32> -> vector<16x32xf32>
    %120 = arith.truncf %119 : vector<16x32xf32> to vector<16x32xbf16>
    %121 = vector.extract_strided_slice %112 {offsets = [0, 0], sizes = [8, 8], strides = [1, 1]} : vector<16x8xf32> to vector<8x8xf32>
    %122 = arith.truncf %121 : vector<8x8xf32> to vector<8x8xbf16>
    %123 = vector.extract_strided_slice %113 {offsets = [0, 0], sizes = [8, 8], strides = [1, 1]} : vector<16x8xf32> to vector<8x8xf32>
    %124 = arith.truncf %123 : vector<8x8xf32> to vector<8x8xbf16>
    %c1_68 = arith.constant 1 : index
    %125 = memref.load %arg7[%c1_68] : memref<4xf32, #tpu.memory_space<smem>>
    %c0_69 = arith.constant 0 : index
    %c1_70 = arith.constant 1 : index
    %126 = memref.load %arg6[%c0_69, %c1_70] : memref<4x4xf32, #tpu.memory_space<smem>>
    %c0_71 = arith.constant 0 : index
    %c0_72 = arith.constant 0 : index
    %c0_73 = arith.constant 0 : index
    %c0_74 = arith.constant 0 : index
    %127 = vector.load %arg2[%c0_71, %c0_72, %c0_73, %c0_74] : memref<2x4x8x8xf32, #tpu.memory_space<vmem>>, vector<1x1x8x8xf32>
    %128 = vector.shape_cast %127 : vector<1x1x8x8xf32> to vector<8x8xf32>
    %129 = vector.broadcast %126 : f32 to vector<8x8xf32>
    %130 = arith.mulf %129, %128 : vector<8x8xf32>
    %131 = vector.broadcast %125 : f32 to vector<8x8xf32>
    %132 = arith.addf %131, %130 : vector<8x8xf32>
    %c1_75 = arith.constant 1 : index
    %c1_76 = arith.constant 1 : index
    %133 = memref.load %arg6[%c1_75, %c1_76] : memref<4x4xf32, #tpu.memory_space<smem>>
    %c0_77 = arith.constant 0 : index
    %c1_78 = arith.constant 1 : index
    %c0_79 = arith.constant 0 : index
    %c0_80 = arith.constant 0 : index
    %134 = vector.load %arg2[%c0_77, %c1_78, %c0_79, %c0_80] : memref<2x4x8x8xf32, #tpu.memory_space<vmem>>, vector<1x1x8x8xf32>
    %135 = vector.shape_cast %134 : vector<1x1x8x8xf32> to vector<8x8xf32>
    %136 = vector.broadcast %133 : f32 to vector<8x8xf32>
    %137 = arith.mulf %136, %135 : vector<8x8xf32>
    %138 = arith.addf %132, %137 : vector<8x8xf32>
    %c2_81 = arith.constant 2 : index
    %c1_82 = arith.constant 1 : index
    %139 = memref.load %arg6[%c2_81, %c1_82] : memref<4x4xf32, #tpu.memory_space<smem>>
    %c0_83 = arith.constant 0 : index
    %c2_84 = arith.constant 2 : index
    %c0_85 = arith.constant 0 : index
    %c0_86 = arith.constant 0 : index
    %140 = vector.load %arg2[%c0_83, %c2_84, %c0_85, %c0_86] : memref<2x4x8x8xf32, #tpu.memory_space<vmem>>, vector<1x1x8x8xf32>
    %141 = vector.shape_cast %140 : vector<1x1x8x8xf32> to vector<8x8xf32>
    %142 = vector.broadcast %139 : f32 to vector<8x8xf32>
    %143 = arith.mulf %142, %141 : vector<8x8xf32>
    %144 = arith.addf %138, %143 : vector<8x8xf32>
    %c3_87 = arith.constant 3 : index
    %c1_88 = arith.constant 1 : index
    %145 = memref.load %arg6[%c3_87, %c1_88] : memref<4x4xf32, #tpu.memory_space<smem>>
    %c0_89 = arith.constant 0 : index
    %c3_90 = arith.constant 3 : index
    %c0_91 = arith.constant 0 : index
    %c0_92 = arith.constant 0 : index
    %146 = vector.load %arg2[%c0_89, %c3_90, %c0_91, %c0_92] : memref<2x4x8x8xf32, #tpu.memory_space<vmem>>, vector<1x1x8x8xf32>
    %147 = vector.shape_cast %146 : vector<1x1x8x8xf32> to vector<8x8xf32>
    %148 = vector.broadcast %145 : f32 to vector<8x8xf32>
    %149 = arith.mulf %148, %147 : vector<8x8xf32>
    %150 = arith.addf %144, %149 : vector<8x8xf32>
    %cst_93 = arith.constant dense<0.000000e+00> : vector<8x8xf32>
    %151 = tpu.matmul %122, %124, %cst_93 {dimension_numbers = #tpu.dot_dimension_numbers<[1], [1], [0], [0], [0, 0, 1, 0], [], []>} : vector<8x8xbf16>, vector<8x8xbf16>, vector<8x8xf32> -> vector<8x8xf32>
    %152 = arith.addf %151, %150 : vector<8x8xf32>
    %cst_94 = arith.constant dense<0xFF800000> : vector<8xf32>
    %153 = vector.multi_reduction <maximumf>, %152, %cst_94 [1] : vector<8x8xf32> to vector<8xf32>
    %154 = vector.shape_cast %153 : vector<8xf32> to vector<8x1xf32>
    %155 = vector.broadcast %154 : vector<8x1xf32> to vector<8x8xf32>
    %156 = arith.subf %152, %155 : vector<8x8xf32>
    %157 = math.exp %156 : vector<8x8xf32>
    %cst_95 = arith.constant dense<0.000000e+00> : vector<8xf32>
    %158 = vector.multi_reduction <add>, %157, %cst_95 [1] : vector<8x8xf32> to vector<8xf32>
    %159 = vector.shape_cast %158 : vector<8xf32> to vector<8x1xf32>
    %160 = tpu.reciprocal %159 {approx = true} : vector<8x1xf32> -> vector<8x1xf32>
    %161 = arith.mulf %159, %160 : vector<8x1xf32>
    %cst_96 = arith.constant 2.000000e+00 : f32
    %162 = vector.broadcast %cst_96 : f32 to vector<8x1xf32>
    %163 = arith.subf %162, %161 : vector<8x1xf32>
    %164 = arith.mulf %160, %163 : vector<8x1xf32>
    %165 = vector.broadcast %164 : vector<8x1xf32> to vector<8x8xf32>
    %166 = arith.mulf %157, %165 : vector<8x8xf32>
    %167 = arith.truncf %166 : vector<8x8xf32> to vector<8x8xbf16>
    %168 = vector.extract_strided_slice %120 {offsets = [0, 0], sizes = [8, 32], strides = [1, 1]} : vector<16x32xbf16> to vector<8x32xbf16>
    %cst_97 = arith.constant dense<0.000000e+00> : vector<8x32xf32>
    %169 = tpu.matmul %167, %168, %cst_97 {dimension_numbers = #tpu.dot_dimension_numbers<[1], [0], [0], [1], [0, 0, 1, 1], [], []>} : vector<8x8xbf16>, vector<8x32xbf16>, vector<8x32xf32> -> vector<8x32xf32>
    %170 = arith.addf %62, %169 : vector<8x32xf32>
    %171 = vector.extract_strided_slice %112 {offsets = [8, 0], sizes = [8, 8], strides = [1, 1]} : vector<16x8xf32> to vector<8x8xf32>
    %172 = arith.truncf %171 : vector<8x8xf32> to vector<8x8xbf16>
    %173 = vector.extract_strided_slice %113 {offsets = [8, 0], sizes = [8, 8], strides = [1, 1]} : vector<16x8xf32> to vector<8x8xf32>
    %174 = arith.truncf %173 : vector<8x8xf32> to vector<8x8xbf16>
    %c1_98 = arith.constant 1 : index
    %175 = memref.load %arg7[%c1_98] : memref<4xf32, #tpu.memory_space<smem>>
    %c0_99 = arith.constant 0 : index
    %c1_100 = arith.constant 1 : index
    %176 = memref.load %arg6[%c0_99, %c1_100] : memref<4x4xf32, #tpu.memory_space<smem>>
    %c1_101 = arith.constant 1 : index
    %c0_102 = arith.constant 0 : index
    %c0_103 = arith.constant 0 : index
    %c0_104 = arith.constant 0 : index
    %177 = vector.load %arg2[%c1_101, %c0_102, %c0_103, %c0_104] : memref<2x4x8x8xf32, #tpu.memory_space<vmem>>, vector<1x1x8x8xf32>
    %178 = vector.shape_cast %177 : vector<1x1x8x8xf32> to vector<8x8xf32>
    %179 = vector.broadcast %176 : f32 to vector<8x8xf32>
    %180 = arith.mulf %179, %178 : vector<8x8xf32>
    %181 = vector.broadcast %175 : f32 to vector<8x8xf32>
    %182 = arith.addf %181, %180 : vector<8x8xf32>
    %c1_105 = arith.constant 1 : index
    %c1_106 = arith.constant 1 : index
    %183 = memref.load %arg6[%c1_105, %c1_106] : memref<4x4xf32, #tpu.memory_space<smem>>
    %c1_107 = arith.constant 1 : index
    %c1_108 = arith.constant 1 : index
    %c0_109 = arith.constant 0 : index
    %c0_110 = arith.constant 0 : index
    %184 = vector.load %arg2[%c1_107, %c1_108, %c0_109, %c0_110] : memref<2x4x8x8xf32, #tpu.memory_space<vmem>>, vector<1x1x8x8xf32>
    %185 = vector.shape_cast %184 : vector<1x1x8x8xf32> to vector<8x8xf32>
    %186 = vector.broadcast %183 : f32 to vector<8x8xf32>
    %187 = arith.mulf %186, %185 : vector<8x8xf32>
    %188 = arith.addf %182, %187 : vector<8x8xf32>
    %c2_111 = arith.constant 2 : index
    %c1_112 = arith.constant 1 : index
    %189 = memref.load %arg6[%c2_111, %c1_112] : memref<4x4xf32, #tpu.memory_space<smem>>
    %c1_113 = arith.constant 1 : index
    %c2_114 = arith.constant 2 : index
    %c0_115 = arith.constant 0 : index
    %c0_116 = arith.constant 0 : index
    %190 = vector.load %arg2[%c1_113, %c2_114, %c0_115, %c0_116] : memref<2x4x8x8xf32, #tpu.memory_space<vmem>>, vector<1x1x8x8xf32>
    %191 = vector.shape_cast %190 : vector<1x1x8x8xf32> to vector<8x8xf32>
    %192 = vector.broadcast %189 : f32 to vector<8x8xf32>
    %193 = arith.mulf %192, %191 : vector<8x8xf32>
    %194 = arith.addf %188, %193 : vector<8x8xf32>
    %c3_117 = arith.constant 3 : index
    %c1_118 = arith.constant 1 : index
    %195 = memref.load %arg6[%c3_117, %c1_118] : memref<4x4xf32, #tpu.memory_space<smem>>
    %c1_119 = arith.constant 1 : index
    %c3_120 = arith.constant 3 : index
    %c0_121 = arith.constant 0 : index
    %c0_122 = arith.constant 0 : index
    %196 = vector.load %arg2[%c1_119, %c3_120, %c0_121, %c0_122] : memref<2x4x8x8xf32, #tpu.memory_space<vmem>>, vector<1x1x8x8xf32>
    %197 = vector.shape_cast %196 : vector<1x1x8x8xf32> to vector<8x8xf32>
    %198 = vector.broadcast %195 : f32 to vector<8x8xf32>
    %199 = arith.mulf %198, %197 : vector<8x8xf32>
    %200 = arith.addf %194, %199 : vector<8x8xf32>
    %cst_123 = arith.constant dense<0.000000e+00> : vector<8x8xf32>
    %201 = tpu.matmul %172, %174, %cst_123 {dimension_numbers = #tpu.dot_dimension_numbers<[1], [1], [0], [0], [0, 0, 1, 0], [], []>} : vector<8x8xbf16>, vector<8x8xbf16>, vector<8x8xf32> -> vector<8x8xf32>
    %202 = arith.addf %201, %200 : vector<8x8xf32>
    %cst_124 = arith.constant dense<0xFF800000> : vector<8xf32>
    %203 = vector.multi_reduction <maximumf>, %202, %cst_124 [1] : vector<8x8xf32> to vector<8xf32>
    %204 = vector.shape_cast %203 : vector<8xf32> to vector<8x1xf32>
    %205 = vector.broadcast %204 : vector<8x1xf32> to vector<8x8xf32>
    %206 = arith.subf %202, %205 : vector<8x8xf32>
    %207 = math.exp %206 : vector<8x8xf32>
    %cst_125 = arith.constant dense<0.000000e+00> : vector<8xf32>
    %208 = vector.multi_reduction <add>, %207, %cst_125 [1] : vector<8x8xf32> to vector<8xf32>
    %209 = vector.shape_cast %208 : vector<8xf32> to vector<8x1xf32>
    %210 = tpu.reciprocal %209 {approx = true} : vector<8x1xf32> -> vector<8x1xf32>
    %211 = arith.mulf %209, %210 : vector<8x1xf32>
    %cst_126 = arith.constant 2.000000e+00 : f32
    %212 = vector.broadcast %cst_126 : f32 to vector<8x1xf32>
    %213 = arith.subf %212, %211 : vector<8x1xf32>
    %214 = arith.mulf %210, %213 : vector<8x1xf32>
    %215 = vector.broadcast %214 : vector<8x1xf32> to vector<8x8xf32>
    %216 = arith.mulf %207, %215 : vector<8x8xf32>
    %217 = arith.truncf %216 : vector<8x8xf32> to vector<8x8xbf16>
    %218 = vector.extract_strided_slice %120 {offsets = [8, 0], sizes = [8, 32], strides = [1, 1]} : vector<16x32xbf16> to vector<8x32xbf16>
    %cst_127 = arith.constant dense<0.000000e+00> : vector<8x32xf32>
    %219 = tpu.matmul %217, %218, %cst_127 {dimension_numbers = #tpu.dot_dimension_numbers<[1], [0], [0], [1], [0, 0, 1, 1], [], []>} : vector<8x8xbf16>, vector<8x32xbf16>, vector<8x32xf32> -> vector<8x32xf32>
    %220 = arith.addf %111, %219 : vector<8x32xf32>
    %221 = vector.extract_strided_slice %4 {offsets = [0, 16], sizes = [16, 8], strides = [1, 1]} : vector<16x96xf32> to vector<16x8xf32>
    %222 = vector.extract_strided_slice %4 {offsets = [0, 48], sizes = [16, 8], strides = [1, 1]} : vector<16x96xf32> to vector<16x8xf32>
    %223 = vector.extract_strided_slice %4 {offsets = [0, 80], sizes = [16, 8], strides = [1, 1]} : vector<16x96xf32> to vector<16x8xf32>
    %224 = arith.truncf %223 : vector<16x8xf32> to vector<16x8xbf16>
    %c2_128 = arith.constant 2 : index
    %c0_129 = arith.constant 0 : index
    %c0_130 = arith.constant 0 : index
    %225 = vector.load %arg4[%c2_128, %c0_129, %c0_130] : memref<4x8x32xf32, #tpu.memory_space<vmem>>, vector<1x8x32xf32>
    %226 = vector.shape_cast %225 : vector<1x8x32xf32> to vector<8x32xf32>
    %227 = arith.truncf %226 : vector<8x32xf32> to vector<8x32xbf16>
    %cst_131 = arith.constant dense<0.000000e+00> : vector<16x32xf32>
    %228 = tpu.matmul %224, %227, %cst_131 {dimension_numbers = #tpu.dot_dimension_numbers<[1], [0], [0], [1], [0, 0, 1, 1], [], []>} : vector<16x8xbf16>, vector<8x32xbf16>, vector<16x32xf32> -> vector<16x32xf32>
    %229 = arith.truncf %228 : vector<16x32xf32> to vector<16x32xbf16>
    %230 = vector.extract_strided_slice %221 {offsets = [0, 0], sizes = [8, 8], strides = [1, 1]} : vector<16x8xf32> to vector<8x8xf32>
    %231 = arith.truncf %230 : vector<8x8xf32> to vector<8x8xbf16>
    %232 = vector.extract_strided_slice %222 {offsets = [0, 0], sizes = [8, 8], strides = [1, 1]} : vector<16x8xf32> to vector<8x8xf32>
    %233 = arith.truncf %232 : vector<8x8xf32> to vector<8x8xbf16>
    %c2_132 = arith.constant 2 : index
    %234 = memref.load %arg7[%c2_132] : memref<4xf32, #tpu.memory_space<smem>>
    %c0_133 = arith.constant 0 : index
    %c2_134 = arith.constant 2 : index
    %235 = memref.load %arg6[%c0_133, %c2_134] : memref<4x4xf32, #tpu.memory_space<smem>>
    %c0_135 = arith.constant 0 : index
    %c0_136 = arith.constant 0 : index
    %c0_137 = arith.constant 0 : index
    %c0_138 = arith.constant 0 : index
    %236 = vector.load %arg2[%c0_135, %c0_136, %c0_137, %c0_138] : memref<2x4x8x8xf32, #tpu.memory_space<vmem>>, vector<1x1x8x8xf32>
    %237 = vector.shape_cast %236 : vector<1x1x8x8xf32> to vector<8x8xf32>
    %238 = vector.broadcast %235 : f32 to vector<8x8xf32>
    %239 = arith.mulf %238, %237 : vector<8x8xf32>
    %240 = vector.broadcast %234 : f32 to vector<8x8xf32>
    %241 = arith.addf %240, %239 : vector<8x8xf32>
    %c1_139 = arith.constant 1 : index
    %c2_140 = arith.constant 2 : index
    %242 = memref.load %arg6[%c1_139, %c2_140] : memref<4x4xf32, #tpu.memory_space<smem>>
    %c0_141 = arith.constant 0 : index
    %c1_142 = arith.constant 1 : index
    %c0_143 = arith.constant 0 : index
    %c0_144 = arith.constant 0 : index
    %243 = vector.load %arg2[%c0_141, %c1_142, %c0_143, %c0_144] : memref<2x4x8x8xf32, #tpu.memory_space<vmem>>, vector<1x1x8x8xf32>
    %244 = vector.shape_cast %243 : vector<1x1x8x8xf32> to vector<8x8xf32>
    %245 = vector.broadcast %242 : f32 to vector<8x8xf32>
    %246 = arith.mulf %245, %244 : vector<8x8xf32>
    %247 = arith.addf %241, %246 : vector<8x8xf32>
    %c2_145 = arith.constant 2 : index
    %c2_146 = arith.constant 2 : index
    %248 = memref.load %arg6[%c2_145, %c2_146] : memref<4x4xf32, #tpu.memory_space<smem>>
    %c0_147 = arith.constant 0 : index
    %c2_148 = arith.constant 2 : index
    %c0_149 = arith.constant 0 : index
    %c0_150 = arith.constant 0 : index
    %249 = vector.load %arg2[%c0_147, %c2_148, %c0_149, %c0_150] : memref<2x4x8x8xf32, #tpu.memory_space<vmem>>, vector<1x1x8x8xf32>
    %250 = vector.shape_cast %249 : vector<1x1x8x8xf32> to vector<8x8xf32>
    %251 = vector.broadcast %248 : f32 to vector<8x8xf32>
    %252 = arith.mulf %251, %250 : vector<8x8xf32>
    %253 = arith.addf %247, %252 : vector<8x8xf32>
    %c3_151 = arith.constant 3 : index
    %c2_152 = arith.constant 2 : index
    %254 = memref.load %arg6[%c3_151, %c2_152] : memref<4x4xf32, #tpu.memory_space<smem>>
    %c0_153 = arith.constant 0 : index
    %c3_154 = arith.constant 3 : index
    %c0_155 = arith.constant 0 : index
    %c0_156 = arith.constant 0 : index
    %255 = vector.load %arg2[%c0_153, %c3_154, %c0_155, %c0_156] : memref<2x4x8x8xf32, #tpu.memory_space<vmem>>, vector<1x1x8x8xf32>
    %256 = vector.shape_cast %255 : vector<1x1x8x8xf32> to vector<8x8xf32>
    %257 = vector.broadcast %254 : f32 to vector<8x8xf32>
    %258 = arith.mulf %257, %256 : vector<8x8xf32>
    %259 = arith.addf %253, %258 : vector<8x8xf32>
    %cst_157 = arith.constant dense<0.000000e+00> : vector<8x8xf32>
    %260 = tpu.matmul %231, %233, %cst_157 {dimension_numbers = #tpu.dot_dimension_numbers<[1], [1], [0], [0], [0, 0, 1, 0], [], []>} : vector<8x8xbf16>, vector<8x8xbf16>, vector<8x8xf32> -> vector<8x8xf32>
    %261 = arith.addf %260, %259 : vector<8x8xf32>
    %cst_158 = arith.constant dense<0xFF800000> : vector<8xf32>
    %262 = vector.multi_reduction <maximumf>, %261, %cst_158 [1] : vector<8x8xf32> to vector<8xf32>
    %263 = vector.shape_cast %262 : vector<8xf32> to vector<8x1xf32>
    %264 = vector.broadcast %263 : vector<8x1xf32> to vector<8x8xf32>
    %265 = arith.subf %261, %264 : vector<8x8xf32>
    %266 = math.exp %265 : vector<8x8xf32>
    %cst_159 = arith.constant dense<0.000000e+00> : vector<8xf32>
    %267 = vector.multi_reduction <add>, %266, %cst_159 [1] : vector<8x8xf32> to vector<8xf32>
    %268 = vector.shape_cast %267 : vector<8xf32> to vector<8x1xf32>
    %269 = tpu.reciprocal %268 {approx = true} : vector<8x1xf32> -> vector<8x1xf32>
    %270 = arith.mulf %268, %269 : vector<8x1xf32>
    %cst_160 = arith.constant 2.000000e+00 : f32
    %271 = vector.broadcast %cst_160 : f32 to vector<8x1xf32>
    %272 = arith.subf %271, %270 : vector<8x1xf32>
    %273 = arith.mulf %269, %272 : vector<8x1xf32>
    %274 = vector.broadcast %273 : vector<8x1xf32> to vector<8x8xf32>
    %275 = arith.mulf %266, %274 : vector<8x8xf32>
    %276 = arith.truncf %275 : vector<8x8xf32> to vector<8x8xbf16>
    %277 = vector.extract_strided_slice %229 {offsets = [0, 0], sizes = [8, 32], strides = [1, 1]} : vector<16x32xbf16> to vector<8x32xbf16>
    %cst_161 = arith.constant dense<0.000000e+00> : vector<8x32xf32>
    %278 = tpu.matmul %276, %277, %cst_161 {dimension_numbers = #tpu.dot_dimension_numbers<[1], [0], [0], [1], [0, 0, 1, 1], [], []>} : vector<8x8xbf16>, vector<8x32xbf16>, vector<8x32xf32> -> vector<8x32xf32>
    %279 = arith.addf %170, %278 : vector<8x32xf32>
    %280 = vector.extract_strided_slice %221 {offsets = [8, 0], sizes = [8, 8], strides = [1, 1]} : vector<16x8xf32> to vector<8x8xf32>
    %281 = arith.truncf %280 : vector<8x8xf32> to vector<8x8xbf16>
    %282 = vector.extract_strided_slice %222 {offsets = [8, 0], sizes = [8, 8], strides = [1, 1]} : vector<16x8xf32> to vector<8x8xf32>
    %283 = arith.truncf %282 : vector<8x8xf32> to vector<8x8xbf16>
    %c2_162 = arith.constant 2 : index
    %284 = memref.load %arg7[%c2_162] : memref<4xf32, #tpu.memory_space<smem>>
    %c0_163 = arith.constant 0 : index
    %c2_164 = arith.constant 2 : index
    %285 = memref.load %arg6[%c0_163, %c2_164] : memref<4x4xf32, #tpu.memory_space<smem>>
    %c1_165 = arith.constant 1 : index
    %c0_166 = arith.constant 0 : index
    %c0_167 = arith.constant 0 : index
    %c0_168 = arith.constant 0 : index
    %286 = vector.load %arg2[%c1_165, %c0_166, %c0_167, %c0_168] : memref<2x4x8x8xf32, #tpu.memory_space<vmem>>, vector<1x1x8x8xf32>
    %287 = vector.shape_cast %286 : vector<1x1x8x8xf32> to vector<8x8xf32>
    %288 = vector.broadcast %285 : f32 to vector<8x8xf32>
    %289 = arith.mulf %288, %287 : vector<8x8xf32>
    %290 = vector.broadcast %284 : f32 to vector<8x8xf32>
    %291 = arith.addf %290, %289 : vector<8x8xf32>
    %c1_169 = arith.constant 1 : index
    %c2_170 = arith.constant 2 : index
    %292 = memref.load %arg6[%c1_169, %c2_170] : memref<4x4xf32, #tpu.memory_space<smem>>
    %c1_171 = arith.constant 1 : index
    %c1_172 = arith.constant 1 : index
    %c0_173 = arith.constant 0 : index
    %c0_174 = arith.constant 0 : index
    %293 = vector.load %arg2[%c1_171, %c1_172, %c0_173, %c0_174] : memref<2x4x8x8xf32, #tpu.memory_space<vmem>>, vector<1x1x8x8xf32>
    %294 = vector.shape_cast %293 : vector<1x1x8x8xf32> to vector<8x8xf32>
    %295 = vector.broadcast %292 : f32 to vector<8x8xf32>
    %296 = arith.mulf %295, %294 : vector<8x8xf32>
    %297 = arith.addf %291, %296 : vector<8x8xf32>
    %c2_175 = arith.constant 2 : index
    %c2_176 = arith.constant 2 : index
    %298 = memref.load %arg6[%c2_175, %c2_176] : memref<4x4xf32, #tpu.memory_space<smem>>
    %c1_177 = arith.constant 1 : index
    %c2_178 = arith.constant 2 : index
    %c0_179 = arith.constant 0 : index
    %c0_180 = arith.constant 0 : index
    %299 = vector.load %arg2[%c1_177, %c2_178, %c0_179, %c0_180] : memref<2x4x8x8xf32, #tpu.memory_space<vmem>>, vector<1x1x8x8xf32>
    %300 = vector.shape_cast %299 : vector<1x1x8x8xf32> to vector<8x8xf32>
    %301 = vector.broadcast %298 : f32 to vector<8x8xf32>
    %302 = arith.mulf %301, %300 : vector<8x8xf32>
    %303 = arith.addf %297, %302 : vector<8x8xf32>
    %c3_181 = arith.constant 3 : index
    %c2_182 = arith.constant 2 : index
    %304 = memref.load %arg6[%c3_181, %c2_182] : memref<4x4xf32, #tpu.memory_space<smem>>
    %c1_183 = arith.constant 1 : index
    %c3_184 = arith.constant 3 : index
    %c0_185 = arith.constant 0 : index
    %c0_186 = arith.constant 0 : index
    %305 = vector.load %arg2[%c1_183, %c3_184, %c0_185, %c0_186] : memref<2x4x8x8xf32, #tpu.memory_space<vmem>>, vector<1x1x8x8xf32>
    %306 = vector.shape_cast %305 : vector<1x1x8x8xf32> to vector<8x8xf32>
    %307 = vector.broadcast %304 : f32 to vector<8x8xf32>
    %308 = arith.mulf %307, %306 : vector<8x8xf32>
    %309 = arith.addf %303, %308 : vector<8x8xf32>
    %cst_187 = arith.constant dense<0.000000e+00> : vector<8x8xf32>
    %310 = tpu.matmul %281, %283, %cst_187 {dimension_numbers = #tpu.dot_dimension_numbers<[1], [1], [0], [0], [0, 0, 1, 0], [], []>} : vector<8x8xbf16>, vector<8x8xbf16>, vector<8x8xf32> -> vector<8x8xf32>
    %311 = arith.addf %310, %309 : vector<8x8xf32>
    %cst_188 = arith.constant dense<0xFF800000> : vector<8xf32>
    %312 = vector.multi_reduction <maximumf>, %311, %cst_188 [1] : vector<8x8xf32> to vector<8xf32>
    %313 = vector.shape_cast %312 : vector<8xf32> to vector<8x1xf32>
    %314 = vector.broadcast %313 : vector<8x1xf32> to vector<8x8xf32>
    %315 = arith.subf %311, %314 : vector<8x8xf32>
    %316 = math.exp %315 : vector<8x8xf32>
    %cst_189 = arith.constant dense<0.000000e+00> : vector<8xf32>
    %317 = vector.multi_reduction <add>, %316, %cst_189 [1] : vector<8x8xf32> to vector<8xf32>
    %318 = vector.shape_cast %317 : vector<8xf32> to vector<8x1xf32>
    %319 = tpu.reciprocal %318 {approx = true} : vector<8x1xf32> -> vector<8x1xf32>
    %320 = arith.mulf %318, %319 : vector<8x1xf32>
    %cst_190 = arith.constant 2.000000e+00 : f32
    %321 = vector.broadcast %cst_190 : f32 to vector<8x1xf32>
    %322 = arith.subf %321, %320 : vector<8x1xf32>
    %323 = arith.mulf %319, %322 : vector<8x1xf32>
    %324 = vector.broadcast %323 : vector<8x1xf32> to vector<8x8xf32>
    %325 = arith.mulf %316, %324 : vector<8x8xf32>
    %326 = arith.truncf %325 : vector<8x8xf32> to vector<8x8xbf16>
    %327 = vector.extract_strided_slice %229 {offsets = [8, 0], sizes = [8, 32], strides = [1, 1]} : vector<16x32xbf16> to vector<8x32xbf16>
    %cst_191 = arith.constant dense<0.000000e+00> : vector<8x32xf32>
    %328 = tpu.matmul %326, %327, %cst_191 {dimension_numbers = #tpu.dot_dimension_numbers<[1], [0], [0], [1], [0, 0, 1, 1], [], []>} : vector<8x8xbf16>, vector<8x32xbf16>, vector<8x32xf32> -> vector<8x32xf32>
    %329 = arith.addf %220, %328 : vector<8x32xf32>
    %330 = vector.extract_strided_slice %4 {offsets = [0, 24], sizes = [16, 8], strides = [1, 1]} : vector<16x96xf32> to vector<16x8xf32>
    %331 = vector.extract_strided_slice %4 {offsets = [0, 56], sizes = [16, 8], strides = [1, 1]} : vector<16x96xf32> to vector<16x8xf32>
    %332 = vector.extract_strided_slice %4 {offsets = [0, 88], sizes = [16, 8], strides = [1, 1]} : vector<16x96xf32> to vector<16x8xf32>
    %333 = arith.truncf %332 : vector<16x8xf32> to vector<16x8xbf16>
    %c3_192 = arith.constant 3 : index
    %c0_193 = arith.constant 0 : index
    %c0_194 = arith.constant 0 : index
    %334 = vector.load %arg4[%c3_192, %c0_193, %c0_194] : memref<4x8x32xf32, #tpu.memory_space<vmem>>, vector<1x8x32xf32>
    %335 = vector.shape_cast %334 : vector<1x8x32xf32> to vector<8x32xf32>
    %336 = arith.truncf %335 : vector<8x32xf32> to vector<8x32xbf16>
    %cst_195 = arith.constant dense<0.000000e+00> : vector<16x32xf32>
    %337 = tpu.matmul %333, %336, %cst_195 {dimension_numbers = #tpu.dot_dimension_numbers<[1], [0], [0], [1], [0, 0, 1, 1], [], []>} : vector<16x8xbf16>, vector<8x32xbf16>, vector<16x32xf32> -> vector<16x32xf32>
    %338 = arith.truncf %337 : vector<16x32xf32> to vector<16x32xbf16>
    %339 = vector.extract_strided_slice %330 {offsets = [0, 0], sizes = [8, 8], strides = [1, 1]} : vector<16x8xf32> to vector<8x8xf32>
    %340 = arith.truncf %339 : vector<8x8xf32> to vector<8x8xbf16>
    %341 = vector.extract_strided_slice %331 {offsets = [0, 0], sizes = [8, 8], strides = [1, 1]} : vector<16x8xf32> to vector<8x8xf32>
    %342 = arith.truncf %341 : vector<8x8xf32> to vector<8x8xbf16>
    %c3_196 = arith.constant 3 : index
    %343 = memref.load %arg7[%c3_196] : memref<4xf32, #tpu.memory_space<smem>>
    %c0_197 = arith.constant 0 : index
    %c3_198 = arith.constant 3 : index
    %344 = memref.load %arg6[%c0_197, %c3_198] : memref<4x4xf32, #tpu.memory_space<smem>>
    %c0_199 = arith.constant 0 : index
    %c0_200 = arith.constant 0 : index
    %c0_201 = arith.constant 0 : index
    %c0_202 = arith.constant 0 : index
    %345 = vector.load %arg2[%c0_199, %c0_200, %c0_201, %c0_202] : memref<2x4x8x8xf32, #tpu.memory_space<vmem>>, vector<1x1x8x8xf32>
    %346 = vector.shape_cast %345 : vector<1x1x8x8xf32> to vector<8x8xf32>
    %347 = vector.broadcast %344 : f32 to vector<8x8xf32>
    %348 = arith.mulf %347, %346 : vector<8x8xf32>
    %349 = vector.broadcast %343 : f32 to vector<8x8xf32>
    %350 = arith.addf %349, %348 : vector<8x8xf32>
    %c1_203 = arith.constant 1 : index
    %c3_204 = arith.constant 3 : index
    %351 = memref.load %arg6[%c1_203, %c3_204] : memref<4x4xf32, #tpu.memory_space<smem>>
    %c0_205 = arith.constant 0 : index
    %c1_206 = arith.constant 1 : index
    %c0_207 = arith.constant 0 : index
    %c0_208 = arith.constant 0 : index
    %352 = vector.load %arg2[%c0_205, %c1_206, %c0_207, %c0_208] : memref<2x4x8x8xf32, #tpu.memory_space<vmem>>, vector<1x1x8x8xf32>
    %353 = vector.shape_cast %352 : vector<1x1x8x8xf32> to vector<8x8xf32>
    %354 = vector.broadcast %351 : f32 to vector<8x8xf32>
    %355 = arith.mulf %354, %353 : vector<8x8xf32>
    %356 = arith.addf %350, %355 : vector<8x8xf32>
    %c2_209 = arith.constant 2 : index
    %c3_210 = arith.constant 3 : index
    %357 = memref.load %arg6[%c2_209, %c3_210] : memref<4x4xf32, #tpu.memory_space<smem>>
    %c0_211 = arith.constant 0 : index
    %c2_212 = arith.constant 2 : index
    %c0_213 = arith.constant 0 : index
    %c0_214 = arith.constant 0 : index
    %358 = vector.load %arg2[%c0_211, %c2_212, %c0_213, %c0_214] : memref<2x4x8x8xf32, #tpu.memory_space<vmem>>, vector<1x1x8x8xf32>
    %359 = vector.shape_cast %358 : vector<1x1x8x8xf32> to vector<8x8xf32>
    %360 = vector.broadcast %357 : f32 to vector<8x8xf32>
    %361 = arith.mulf %360, %359 : vector<8x8xf32>
    %362 = arith.addf %356, %361 : vector<8x8xf32>
    %c3_215 = arith.constant 3 : index
    %c3_216 = arith.constant 3 : index
    %363 = memref.load %arg6[%c3_215, %c3_216] : memref<4x4xf32, #tpu.memory_space<smem>>
    %c0_217 = arith.constant 0 : index
    %c3_218 = arith.constant 3 : index
    %c0_219 = arith.constant 0 : index
    %c0_220 = arith.constant 0 : index
    %364 = vector.load %arg2[%c0_217, %c3_218, %c0_219, %c0_220] : memref<2x4x8x8xf32, #tpu.memory_space<vmem>>, vector<1x1x8x8xf32>
    %365 = vector.shape_cast %364 : vector<1x1x8x8xf32> to vector<8x8xf32>
    %366 = vector.broadcast %363 : f32 to vector<8x8xf32>
    %367 = arith.mulf %366, %365 : vector<8x8xf32>
    %368 = arith.addf %362, %367 : vector<8x8xf32>
    %cst_221 = arith.constant dense<0.000000e+00> : vector<8x8xf32>
    %369 = tpu.matmul %340, %342, %cst_221 {dimension_numbers = #tpu.dot_dimension_numbers<[1], [1], [0], [0], [0, 0, 1, 0], [], []>} : vector<8x8xbf16>, vector<8x8xbf16>, vector<8x8xf32> -> vector<8x8xf32>
    %370 = arith.addf %369, %368 : vector<8x8xf32>
    %cst_222 = arith.constant dense<0xFF800000> : vector<8xf32>
    %371 = vector.multi_reduction <maximumf>, %370, %cst_222 [1] : vector<8x8xf32> to vector<8xf32>
    %372 = vector.shape_cast %371 : vector<8xf32> to vector<8x1xf32>
    %373 = vector.broadcast %372 : vector<8x1xf32> to vector<8x8xf32>
    %374 = arith.subf %370, %373 : vector<8x8xf32>
    %375 = math.exp %374 : vector<8x8xf32>
    %cst_223 = arith.constant dense<0.000000e+00> : vector<8xf32>
    %376 = vector.multi_reduction <add>, %375, %cst_223 [1] : vector<8x8xf32> to vector<8xf32>
    %377 = vector.shape_cast %376 : vector<8xf32> to vector<8x1xf32>
    %378 = tpu.reciprocal %377 {approx = true} : vector<8x1xf32> -> vector<8x1xf32>
    %379 = arith.mulf %377, %378 : vector<8x1xf32>
    %cst_224 = arith.constant 2.000000e+00 : f32
    %380 = vector.broadcast %cst_224 : f32 to vector<8x1xf32>
    %381 = arith.subf %380, %379 : vector<8x1xf32>
    %382 = arith.mulf %378, %381 : vector<8x1xf32>
    %383 = vector.broadcast %382 : vector<8x1xf32> to vector<8x8xf32>
    %384 = arith.mulf %375, %383 : vector<8x8xf32>
    %385 = arith.truncf %384 : vector<8x8xf32> to vector<8x8xbf16>
    %386 = vector.extract_strided_slice %338 {offsets = [0, 0], sizes = [8, 32], strides = [1, 1]} : vector<16x32xbf16> to vector<8x32xbf16>
    %cst_225 = arith.constant dense<0.000000e+00> : vector<8x32xf32>
    %387 = tpu.matmul %385, %386, %cst_225 {dimension_numbers = #tpu.dot_dimension_numbers<[1], [0], [0], [1], [0, 0, 1, 1], [], []>} : vector<8x8xbf16>, vector<8x32xbf16>, vector<8x32xf32> -> vector<8x32xf32>
    %388 = arith.addf %279, %387 : vector<8x32xf32>
    %389 = vector.extract_strided_slice %330 {offsets = [8, 0], sizes = [8, 8], strides = [1, 1]} : vector<16x8xf32> to vector<8x8xf32>
    %390 = arith.truncf %389 : vector<8x8xf32> to vector<8x8xbf16>
    %391 = vector.extract_strided_slice %331 {offsets = [8, 0], sizes = [8, 8], strides = [1, 1]} : vector<16x8xf32> to vector<8x8xf32>
    %392 = arith.truncf %391 : vector<8x8xf32> to vector<8x8xbf16>
    %c3_226 = arith.constant 3 : index
    %393 = memref.load %arg7[%c3_226] : memref<4xf32, #tpu.memory_space<smem>>
    %c0_227 = arith.constant 0 : index
    %c3_228 = arith.constant 3 : index
    %394 = memref.load %arg6[%c0_227, %c3_228] : memref<4x4xf32, #tpu.memory_space<smem>>
    %c1_229 = arith.constant 1 : index
    %c0_230 = arith.constant 0 : index
    %c0_231 = arith.constant 0 : index
    %c0_232 = arith.constant 0 : index
    %395 = vector.load %arg2[%c1_229, %c0_230, %c0_231, %c0_232] : memref<2x4x8x8xf32, #tpu.memory_space<vmem>>, vector<1x1x8x8xf32>
    %396 = vector.shape_cast %395 : vector<1x1x8x8xf32> to vector<8x8xf32>
    %397 = vector.broadcast %394 : f32 to vector<8x8xf32>
    %398 = arith.mulf %397, %396 : vector<8x8xf32>
    %399 = vector.broadcast %393 : f32 to vector<8x8xf32>
    %400 = arith.addf %399, %398 : vector<8x8xf32>
    %c1_233 = arith.constant 1 : index
    %c3_234 = arith.constant 3 : index
    %401 = memref.load %arg6[%c1_233, %c3_234] : memref<4x4xf32, #tpu.memory_space<smem>>
    %c1_235 = arith.constant 1 : index
    %c1_236 = arith.constant 1 : index
    %c0_237 = arith.constant 0 : index
    %c0_238 = arith.constant 0 : index
    %402 = vector.load %arg2[%c1_235, %c1_236, %c0_237, %c0_238] : memref<2x4x8x8xf32, #tpu.memory_space<vmem>>, vector<1x1x8x8xf32>
    %403 = vector.shape_cast %402 : vector<1x1x8x8xf32> to vector<8x8xf32>
    %404 = vector.broadcast %401 : f32 to vector<8x8xf32>
    %405 = arith.mulf %404, %403 : vector<8x8xf32>
    %406 = arith.addf %400, %405 : vector<8x8xf32>
    %c2_239 = arith.constant 2 : index
    %c3_240 = arith.constant 3 : index
    %407 = memref.load %arg6[%c2_239, %c3_240] : memref<4x4xf32, #tpu.memory_space<smem>>
    %c1_241 = arith.constant 1 : index
    %c2_242 = arith.constant 2 : index
    %c0_243 = arith.constant 0 : index
    %c0_244 = arith.constant 0 : index
    %408 = vector.load %arg2[%c1_241, %c2_242, %c0_243, %c0_244] : memref<2x4x8x8xf32, #tpu.memory_space<vmem>>, vector<1x1x8x8xf32>
    %409 = vector.shape_cast %408 : vector<1x1x8x8xf32> to vector<8x8xf32>
    %410 = vector.broadcast %407 : f32 to vector<8x8xf32>
    %411 = arith.mulf %410, %409 : vector<8x8xf32>
    %412 = arith.addf %406, %411 : vector<8x8xf32>
    %c3_245 = arith.constant 3 : index
    %c3_246 = arith.constant 3 : index
    %413 = memref.load %arg6[%c3_245, %c3_246] : memref<4x4xf32, #tpu.memory_space<smem>>
    %c1_247 = arith.constant 1 : index
    %c3_248 = arith.constant 3 : index
    %c0_249 = arith.constant 0 : index
    %c0_250 = arith.constant 0 : index
    %414 = vector.load %arg2[%c1_247, %c3_248, %c0_249, %c0_250] : memref<2x4x8x8xf32, #tpu.memory_space<vmem>>, vector<1x1x8x8xf32>
    %415 = vector.shape_cast %414 : vector<1x1x8x8xf32> to vector<8x8xf32>
    %416 = vector.broadcast %413 : f32 to vector<8x8xf32>
    %417 = arith.mulf %416, %415 : vector<8x8xf32>
    %418 = arith.addf %412, %417 : vector<8x8xf32>
    %cst_251 = arith.constant dense<0.000000e+00> : vector<8x8xf32>
    %419 = tpu.matmul %390, %392, %cst_251 {dimension_numbers = #tpu.dot_dimension_numbers<[1], [1], [0], [0], [0, 0, 1, 0], [], []>} : vector<8x8xbf16>, vector<8x8xbf16>, vector<8x8xf32> -> vector<8x8xf32>
    %420 = arith.addf %419, %418 : vector<8x8xf32>
    %cst_252 = arith.constant dense<0xFF800000> : vector<8xf32>
    %421 = vector.multi_reduction <maximumf>, %420, %cst_252 [1] : vector<8x8xf32> to vector<8xf32>
    %422 = vector.shape_cast %421 : vector<8xf32> to vector<8x1xf32>
    %423 = vector.broadcast %422 : vector<8x1xf32> to vector<8x8xf32>
    %424 = arith.subf %420, %423 : vector<8x8xf32>
    %425 = math.exp %424 : vector<8x8xf32>
    %cst_253 = arith.constant dense<0.000000e+00> : vector<8xf32>
    %426 = vector.multi_reduction <add>, %425, %cst_253 [1] : vector<8x8xf32> to vector<8xf32>
    %427 = vector.shape_cast %426 : vector<8xf32> to vector<8x1xf32>
    %428 = tpu.reciprocal %427 {approx = true} : vector<8x1xf32> -> vector<8x1xf32>
    %429 = arith.mulf %427, %428 : vector<8x1xf32>
    %cst_254 = arith.constant 2.000000e+00 : f32
    %430 = vector.broadcast %cst_254 : f32 to vector<8x1xf32>
    %431 = arith.subf %430, %429 : vector<8x1xf32>
    %432 = arith.mulf %428, %431 : vector<8x1xf32>
    %433 = vector.broadcast %432 : vector<8x1xf32> to vector<8x8xf32>
    %434 = arith.mulf %425, %433 : vector<8x8xf32>
    %435 = arith.truncf %434 : vector<8x8xf32> to vector<8x8xbf16>
    %436 = vector.extract_strided_slice %338 {offsets = [8, 0], sizes = [8, 32], strides = [1, 1]} : vector<16x32xbf16> to vector<8x32xbf16>
    %cst_255 = arith.constant dense<0.000000e+00> : vector<8x32xf32>
    %437 = tpu.matmul %435, %436, %cst_255 {dimension_numbers = #tpu.dot_dimension_numbers<[1], [0], [0], [1], [0, 0, 1, 1], [], []>} : vector<8x8xbf16>, vector<8x32xbf16>, vector<8x32xf32> -> vector<8x32xf32>
    %438 = arith.addf %329, %437 : vector<8x32xf32>
    %439 = tpu.concatenate %388, %438 in 0 : vector<8x32xf32>, vector<8x32xf32> -> vector<16x32xf32>
    %c0_256 = arith.constant 0 : index
    %c0_257 = arith.constant 0 : index
    %440 = vector.load %arg5[%c0_256, %c0_257] : memref<1x32xf32, #tpu.memory_space<vmem>>, vector<1x32xf32>
    %441 = vector.broadcast %440 : vector<1x32xf32> to vector<16x32xf32>
    %442 = arith.addf %439, %441 : vector<16x32xf32>
    %c0_258 = arith.constant 0 : index
    %c0_259 = arith.constant 0 : index
    %443 = vector.load %arg8[%c0_258, %c0_259] : memref<16x32xf32, #tpu.memory_space<vmem>>, vector<16x32xf32>
    tpu.vector_store %arg8[%c0_258, %c0_259], %442 {strides = array<i32>} : memref<16x32xf32, #tpu.memory_space<vmem>>, vector<16x32xf32>,
    return
  }
  func.func @transform_0(%arg0: i32) -> (i32, i32) {
    %c0_i32 = arith.constant 0 : i32
    %c0_i32_0 = arith.constant 0 : i32
    return %arg0, %c0_i32 : i32, i32
  }
  func.func @transform_1(%arg0: i32) -> (i32, i32, i32, i32) {
    %c0_i32 = arith.constant 0 : i32
    %c0_i32_0 = arith.constant 0 : i32
    %c0_i32_1 = arith.constant 0 : i32
    %c0_i32_2 = arith.constant 0 : i32
    return %arg0, %c0_i32, %c0_i32_0, %c0_i32_1 : i32, i32, i32, i32
  }
  func.func @transform_2(%arg0: i32) -> (i32, i32) {
    %c0_i32 = arith.constant 0 : i32
    %c0_i32_0 = arith.constant 0 : i32
    %c0_i32_1 = arith.constant 0 : i32
    return %c0_i32, %c0_i32_0 : i32, i32
  }
  func.func @transform_3(%arg0: i32) -> (i32, i32, i32) {
    %c0_i32 = arith.constant 0 : i32
    %c0_i32_0 = arith.constant 0 : i32
    %c0_i32_1 = arith.constant 0 : i32
    %c0_i32_2 = arith.constant 0 : i32
    return %c0_i32, %c0_i32_0, %c0_i32_1 : i32, i32, i32
  }
  func.func @transform_4(%arg0: i32) -> (i32, i32) {
    %c0_i32 = arith.constant 0 : i32
    %c0_i32_0 = arith.constant 0 : i32
    %c0_i32_1 = arith.constant 0 : i32
    return %c0_i32, %c0_i32_0 : i32, i32
  }
  func.func @transform_5(%arg0: i32) -> (i32, i32) {
    %c0_i32 = arith.constant 0 : i32
    %c0_i32_0 = arith.constant 0 : i32
    %c0_i32_1 = arith.constant 0 : i32
    return %c0_i32, %c0_i32_0 : i32, i32
  }
  func.func @transform_6(%arg0: i32) -> i32 {
    %c0_i32 = arith.constant 0 : i32
    %c0_i32_0 = arith.constant 0 : i32
    return %c0_i32 : i32
  }
  func.func @transform_7(%arg0: i32) -> (i32, i32) {
    %c0_i32 = arith.constant 0 : i32
    %c0_i32_0 = arith.constant 0 : i32
    return %arg0, %c0_i32 : i32, i32
  }
}

</mosaic_0001>

<bundles_post_ra>
// kernel: tpu_custom_call.1
= control target key start
LH: loop header
LB: loop body
LE: loop exit
PB: predicated region body
PF: predicated region fallthrough
CT: control target
= control target key end

     0   :  { %12 = vsyncpa [#allocation3], 0  ;;  %s2207_s0 = inlined_call_operand.hbm [shape: f32[16,32], index: 0, kind: input, shape index: {}]   ;;  %s2208_s1 = inlined_call_operand.hbm [shape: f32[2,4,8,8], index: 1, kind: input, shape index: {}]   ;;  %s2209_s2 = inlined_call_operand.hbm [shape: f32[32,96], index: 2, kind: input, shape index: {}]   ;;  %s2210_s3 = inlined_call_operand.hbm [shape: f32[4,8,32], index: 3, kind: input, shape index: {}]   ;;  %s2211_s4 = inlined_call_operand.vmem [shape: f32[1,32], index: 4, kind: input, shape index: {}]   ;;  %s2212_s5 = inlined_call_operand.vmem [shape: f32[4,4], index: 5, kind: input, shape index: {}]   ;;  %s2213_s6 = inlined_call_operand.vmem [shape: f32[4], index: 6, kind: input, shape index: {}]   ;;  %s2214_s7 = inlined_call_operand.hbm [shape: f32[16,32], index: 7, kind: output, shape index: {}]  }
   0x1   :  { %13 = vsyncpa [#allocation7], 0 }
   0x2   :  { %14 = vsyncpa [#allocation10], 0 }
   0x3   :  { %15 = vsyncpa [#allocation5], 0 }
   0x4   :  { %16 = vsyncpa [#allocation13], 0 }
   0x5   :  { %17 = vsyncpa [#allocation4], 0  ;;  %s1829_s24 = smov [#allocation6]   ;;  %s1830_s26 = smov [#allocation2]  }
   0x6   :  { %s35_s25 = sshll.u32 %s1829_s24, 4  ;;  %s23_s27 = sshll.u32 %s1830_s26, 4  ;;  %s36_s25 = int_to_ptr.vmem [resolvable:$true] %s35_s25  ;;  %s24_s27 = int_to_ptr.vmem [resolvable:$true] %s23_s27 }
   0x7   :  { %s1701_s28 = scalar_lea.vmem %s36_s25, 1024  ;;  %p1706_p1 = scmp.lt.s32.totalorder %s36_s25, %s36_s25 }
   0x8   :  { %p1702_p0 = scmp.ne.s32.totalorder %s36_s25, %s1701_s28  ;;  %p1707_p2 = scmp.lt.s32.totalorder %s1701_s28, %s1701_s28 }
   0xa   :  { %p1708_p3 = por %p1707_p2, %p1706_p1 }
   0xc   :  { %p1709_p4 = pnand %p1708_p3, %p1702_p0 }
   0xe   :  { %1712 = shalt.err (!%p1709_p4)
}
   0xf   :  { %s1831_s29 = smov 128   ;;  %s1832_s30 = smov 8  }
  0x10   :  { %41 = dma.hbm_to_vmem [thread:$0]  %s2208_s1, 1024, %s36_s25, [#allocation7], %s1831_s29, %s1831_s29, %s1832_s30  }
  0x11   :  { %s1721_s10 = scalar_lea.vmem %s24_s27, 256  ;;  %p1726_p6 = scmp.lt.s32.totalorder %s24_s27, %s24_s27 }
  0x12   :  { %p1722_p5 = scmp.ne.s32.totalorder %s24_s27, %s1721_s10  ;;  %p1727_p7 = scmp.lt.s32.totalorder %s1721_s10, %s1721_s10 }
  0x14   :  { %p1728_p8 = por %p1727_p7, %p1726_p6 }
  0x16   :  { %p1729_p9 = pnand %p1728_p8, %p1722_p5 }
  0x18   :  { %1732 = shalt.err (!%p1729_p9)
}
  0x19   :  { %29 = dma.hbm_to_vmem [thread:$0]  %s2207_s0, 256, %s24_s27, [#allocation3], %s1831_s29, %s1831_s29, %s1832_s30  }
  0x1a   :  { %s1833_s13 = smov [#allocation8]   ;;  %s1834_s15 = smov [#allocation9]  }
  0x1b   :  { %s47_s14 = sshll.u32 %s1833_s13, 4  ;;  %s59_s16 = sshll.u32 %s1834_s15, 4  ;;  %s48_s14 = int_to_ptr.vmem [resolvable:$true] %s47_s14  ;;  %s60_s16 = int_to_ptr.vmem [resolvable:$true] %s59_s16 }
  0x1c   :  { %s1741_s1 = scalar_lea.vmem %s48_s14, 512  ;;  %p1746_p11 = scmp.lt.s32.totalorder %s48_s14, %s48_s14 }
  0x1d   :  { %p1742_p10 = scmp.ne.s32.totalorder %s48_s14, %s1741_s1  ;;  %p1747_p12 = scmp.lt.s32.totalorder %s1741_s1, %s1741_s1 }
  0x1f   :  { %p1748_p13 = por %p1747_p12, %p1746_p11 }
  0x21   :  { %p1749_p0 = pnand %p1748_p13, %p1742_p10 }
  0x23   :  { %1752 = shalt.err (!%p1749_p0)
}
  0x24   :  { %53 = dma.hbm_to_vmem [thread:$0]  %s2209_s2, 512, %s48_s14, [#allocation7], %s1831_s29, %s1831_s29, %s1832_s30  }
  0x25   :  { %s1761_s0 = scalar_lea.vmem %s60_s16, 512  ;;  %p1766_p2 = scmp.lt.s32.totalorder %s60_s16, %s60_s16 }
  0x26   :  { %p1762_p1 = scmp.ne.s32.totalorder %s60_s16, %s1761_s0  ;;  %p1767_p3 = scmp.lt.s32.totalorder %s1761_s0, %s1761_s0 }
  0x28   :  { %p1768_p4 = por %p1767_p3, %p1766_p2 }
  0x2a   :  { %p1769_p5 = pnand %p1768_p4, %p1762_p1 }
  0x2c   :  { %1772 = shalt.err (!%p1769_p5)
}
  0x2d   :  { %65 = dma.hbm_to_vmem [thread:$0]  %s2210_s3, 512, %s60_s16, [#allocation10], %s1831_s29, %s1831_s29, %s1832_s30  }
  0x2e   :  { %s74_s23 = sshll.u32 %s2212_s5, 4  ;;  %s84_s25 = sshll.u32 %s2213_s6, 4  ;;  %s75_s23 = int_to_ptr.vmem [resolvable:$true] %s74_s23  ;;  %s85_s25 = int_to_ptr.vmem [resolvable:$true] %s84_s25 }
  0x2f   :  { %s1773_s26 = scalar_lea.vmem %s75_s23, 64  ;;  %p1778_p7 = scmp.lt.s32.totalorder %s75_s23, %s75_s23 }
  0x30   :  { %p1774_p6 = scmp.ne.s32.totalorder %s75_s23, %s1773_s26  ;;  %p1779_p8 = scmp.lt.s32.totalorder %s1773_s26, %s1773_s26 }
  0x32   :  { %p1780_p9 = por %p1779_p8, %p1778_p7 }
  0x34   :  { %p1781_p10 = pnand %p1780_p9, %p1774_p6 }
  0x36   :  { %1784 = shalt.err (!%p1781_p10)
}
  0x37   :  { %s1835_s27 = smov [#allocation11]   ;;  %s1785_s3 = scalar_lea.vmem %s85_s25, 16 }
  0x38   :  { %77 = dma.vmem_to_smem %s75_s23, 64, %s1835_s27, [#allocation5]  }
  0x39   :  { %p1786_p11 = scmp.ne.s32.totalorder %s85_s25, %s1785_s3  ;;  %p1790_p12 = scmp.lt.s32.totalorder %s85_s25, %s85_s25 }
  0x3a   :  { %p1791_p13 = scmp.lt.s32.totalorder %s1785_s3, %s1785_s3 }
  0x3c   :  { %p1792_p0 = por %p1791_p13, %p1790_p12 }
  0x3e   :  { %p1793_p1 = pnand %p1792_p0, %p1786_p11 }
  0x40   :  { %1796 = shalt.err (!%p1793_p1)
}
  0x41   :  { %s1836_s5 = smov [#allocation12]  }
  0x42   :  { %87 = dma.vmem_to_smem %s85_s25, 16, %s1836_s5, [#allocation13]  }
  0x43   :  { %1817 = dma.done.wait [#allocation3], 256  }
  0x44   :  { %1818 = vsyncadd [#allocation3], 4294967040 }
  0x45   :  { %1819 = dma.done.wait [#allocation7], 1536  }
  0x46   :  { %1820 = vsyncadd [#allocation7], 4294965760 }
  0x47   :  { %1821 = dma.done.wait [#allocation10], 512  }
  0x48   :  { %1822 = vsyncadd [#allocation10], 4294966784 }
  0x49   :  { %1823 = dma.done.wait [#allocation5], 64  }
  0x4a   :  { %1824 = vsyncadd [#allocation5], 4294967232 }
  0x4b   :  { %1825 = dma.done.wait [#allocation13], 16  }
  0x4c   :  { %1826 = vsyncadd [#allocation13], 4294967280 }
  0x4d   :  { %106 = sfence }
  0x4e   :  { %v113_v0 = vld [vmem:[#allocation8 + $0x10] sm:$0xff]  ;;  %v114_v1 = vld [vmem:[#allocation8 + $0x18] sm:$0xff]  ;;  %v111_v2 = vld [vmem:[#allocation8] sm:$0xff]  ;;  %v1837_v3 = vmov 0.0   ;;  %vm1838_vm0 = vmmov 0   ;;  %vm117_vm1 = vcmask 261120  }
  0x4f   :  { %1511 = vmatprep.subr.bf16.mxu0 %v1837_v3  ;;  %v116_v4 = vpack.c.bf16 %v114_v1, %v113_v0  ;;  %v112_v5 = vld [vmem:[#allocation8 + $0x8] sm:$0xff]  ;;  %1515 = vmatprep.mubr.msk.bf16.mxu0 %vm1838_vm0, %v1837_v3  ;;  %v108_v7 = vld [vmem:[#allocation2] sm:$0xff]  ;;  %v109_v8 = vld [vmem:[#allocation2 + $0x8] sm:$0xff]  ;;  %vm172_vm2 = vcmask 1043456   ;;  %s1839_s6 = smov 120   ;;  %s1840_s28 = smov 96  }
  0x50   :  { %1519 = vmatprep.subr.bf16.mxu1 %v1837_v3  ;;  %1521 = vmatprep.mubr.msk.bf16.mxu1 %vm1838_vm0, %v1837_v3  ;;  %v115_v6 = vpack.c.bf16 %v112_v5, %v111_v2  ;;  %v110_v9 = vpack.c.bf16 %v109_v8, %v108_v7  ;;  %v163_v10 = vld [vmem:[#allocation9] sm:$0xff]  ;;  %s1841_s8 = smov 64   ;;  %s1842_s9 = smov 88   ;;  %vm168_vm3 = vcmask 64512   ;;  %v390_v26 = vld [vmem:[#allocation9 + $0x8] sm:$0xff]  ;;  %v1998_v42 = vld [vmem:[#allocation6 + $0x10] sm:$0xff] }
  0x51   :  { %1512 = vmatpush3.bf16.msra.mxu0 %v116_v4  ;;  %v164_v11 = vpack.c.bf16 %v163_v10, %v163_v10  ;;  %s1843_s10 = smov 56   ;;  %v391_v29 = vpack.c.bf16 %v390_v26, %v390_v26  ;;  %s1973_s11 = sld [smem:[#allocation11 + $0x1]]  ;;  %v1979_v32 = vld [vmem:[#allocation6] sm:$0xff]  ;;  %v1987_v35 = vld [vmem:[#allocation6 + $0x8] sm:$0xff]  ;;  %v2006_v49 = vld [vmem:[#allocation6 + $0x18] sm:$0xff] }
  0x52   :  { %1513 = vmatprep.subr.bf16.mxu0 %v1837_v3  ;;  %s1975_s12 = sld [smem:[#allocation12 + $0x1]]  ;;  %s1844_s19 = smov 80  }
  0x53   :  { %v174_v12 = vsel %vm172_vm2, %v164_v11, 0  ;;  %v398_v30 = vsel %vm172_vm2, %v391_v29, 0  ;;  %s1977_s13 = sld [smem:[#allocation11 + $0x81]]  ;;  %s1845_s20 = smov 112  }
  0x54   :  { %1520 = vmatpush3.bf16.msra.mxu1 %v174_v12  ;;  %s1982_s14 = sld [smem:[#allocation11 + $0x101]]  ;;  %s1846_s21 = smov 48  }
  0x55   :  { %1514 = vmatpush3.bf16.msra.mxu0 %v115_v6  ;;  %1525 = vmatprep.subr.bf16.mxu1 %v1837_v3  ;;  %s1991_s15 = sld [smem:[#allocation11 + $0x181]]  ;;  %s1847_s22 = smov 72  }
  0x56   :  { %1531 = vmatprep.subr.bf16.mxu0 %v1837_v3  ;;  %s220_s16 = sld [smem:[#allocation11]]  ;;  %s1848_s23 = smov 104  }
  0x57   :  { %v444_v33 = vstv %s1973_s11  ;;  %s219_s1 = sld [smem:[#allocation12]]  ;;  %s1849_s2 = smov 40  }
  0x58   :  { %1516 = vmatmul.mubr.msk.bf16.vlgmr.msra.gmra.mxu0 %vm117_vm1, %v110_v9  ;;  %v445_v34 = vmul.f32 %v444_v33, %v1979_v32  ;;  %v446_v36 = vstv %s1975_s12  ;;  %s1430_s17 = sld [smem:[#allocation11 + $0x80]]  ;;  %s1850_s12 = smov [#allocation14]  }
  0x59   :  { %1533 = vmatprep.mubr.msk.bf16.mxu0 %vm1838_vm0, %v1837_v3  ;;  %v449_v37 = vstv %s1977_s13  ;;  %s1431_s18 = sld [smem:[#allocation11 + $0x100]]  ;;  %s1412_s13 = sshll.u32 %s1850_s12, 4  ;;  %s1413_s13 = int_to_ptr.vmem [resolvable:$true] %s1412_s13 }
  0x5a   :  { %v447_v39 = vadd.f32 %v446_v36, %v445_v34  ;;  %v450_v40 = vmul.f32 %v449_v37, %v1987_v35  ;;  %v453_v43 = vstv %s1982_s14  ;;  %s1432_s0 = sld [smem:[#allocation11 + $0x180]]  ;;  %p1802_p3 = scmp.lt.s32.totalorder %s1413_s13, %s1413_s13 }
  0x5b   :  { %v454_v47 = vmul.f32 %v453_v43, %v1998_v42  ;;  %v457_v50 = vstv %s1991_s15  ;;  %s1449_s24 = sld [smem:[#allocation11 + $0x2]] }
  0x5c   :  { %v451_v46 = vadd.f32 %v450_v40, %v447_v39  ;;  %v458_v54 = vmul.f32 %v457_v50, %v2006_v49  ;;  %v222_v12 = vstv %s220_s16  ;;  %s1448_s25 = sld [smem:[#allocation12 + $0x2]] }
  0x5d   :  { %v223_v39 = vmul.f32 %v222_v12, %v1979_v32  ;;  %s1450_s26 = sld [smem:[#allocation11 + $0x82]] }
  0x5e   :  { %v455_v53 = vadd.f32 %v454_v47, %v451_v46  ;;  %s1451_s27 = sld [smem:[#allocation11 + $0x102]] }
  0x5f   :  { %s1452_s3 = sld [smem:[#allocation11 + $0x182]] }
  0x60   :  { %v459_v57 = vadd.f32 %v458_v54, %v455_v53  ;;  %s1459_s5 = sld [smem:[#allocation11 + $0x3]] }
 0x118   :  { %v155_v13 = vpop.f32.mrf.mxu0 }
 0x119   :  { %v1934_v14 = vpack.c.bf16 %v155_v13, %v155_v13 }
 0x11a   :  { %v1517_v15 = vpop.f32.mrf.mxu0 }
 0x11b   :  { %460 = vrot.lane.b32.xlu1 %v1934_v14, %s1839_s6 }
 0x11c   :  { %v158_v16 = vpop.f32.mrf.mxu0 }
 0x11d   :  { %v1938_v17 = vpack.c.bf16 %v158_v16, %v155_v13  ;;  %v1940_v18 = vpack.c.bf16 %v158_v16, %v158_v16  ;;  %v2023_v13 = vld [vmem:[#allocation6 + $0x20] sm:$0xff]  ;;  %v224_v16 = vstv %s219_s1 }
 0x11e   :  { %v1518_v19 = vpop.f32.mrf.mxu0  ;;  %v311_v15 = vmul.f32 %v2023_v13, %v222_v12  ;;  %v225_v40 = vadd.f32 %v224_v16, %v223_v39 }
 0x11f   :  { %326 = vrot.lane.b32.xlu0 %v1940_v18, %s1840_s28  ;;  %166 = vrot.lane.b32.xlu1 %v1938_v17, %s1841_s8  ;;  %v229_v19 = vstv %s1430_s17  ;;  %s1461_s8 = sld [smem:[#allocation11 + $0x103]] }
 0x123   :  { %462 = vrot.lane.b32.xlu0 %v1934_v14, %s1842_s9  ;;  %392 = vrot.lane.b32.xlu1 %v1938_v17, %s1843_s10 }
 0x127   :  { %245 = vrot.lane.b32.xlu0 %v1934_v14, %s1840_s28  ;;  %s1460_s28 = sld [smem:[#allocation11 + $0x83]] }
 0x18d   :  { %v461_v20 = vpop.permute.xlu1 %460 }
 0x191   :  { %v327_v21 = vpop.permute.xlu0 %326  ;;  %v167_v22 = vpop.permute.xlu1 %166 }
 0x192   :  { %v332_v23 = vsel %vm168_vm3, %v327_v21, 0  ;;  %1522 = vmatmul.mubr.msk.bf16.vlgmr.msra.gmra.mxu1 %vm168_vm3, %v167_v22  ;;  %v312_v21 = vadd.f32 %v311_v15, %v224_v16 }
 0x193   :  { %1532 = vmatpush3.bf16.xpose.msra.mxu0 %v332_v23  ;;  %1527 = vmatprep.mubr.msk.bf16.mxu1 %vm1838_vm0, %v1837_v3  ;;  %v235_v23 = vstv %s1431_s18 }
 0x194   :  { %1543 = vmatprep.subr.bf16.mxu0 %v1837_v3  ;;  %v236_v46 = vmul.f32 %v235_v23, %v1998_v42 }
 0x195   :  { %v463_v24 = vpop.permute.xlu0 %462  ;;  %v393_v31 = vpop.permute.xlu1 %392 }
 0x196   :  { %v468_v27 = vsel %vm168_vm3, %v463_v24, 0  ;;  %v2029_v24 = vld [vmem:[#allocation6 + $0x30] sm:$0xff] }
 0x197   :  { %v319_v26 = vmul.f32 %v2029_v24, %v235_v23 }
 0x199   :  { %v246_v25 = vpop.permute.xlu0 %245 }
 0x19a   :  { %v251_v28 = vsel %vm168_vm3, %v246_v25, 0  ;;  %1534 = vmatmul.mubr.msk.bf16.vlgmr.msra.gmra.mxu0 %vm168_vm3, %v1940_v18 }
 0x19b   :  { %1526 = vmatpush3.bf16.xpose.msra.mxu1 %v251_v28  ;;  %1544 = vmatpush3.bf16.xpose.msra.mxu0 %v468_v27  ;;  %v241_v27 = vstv %s1432_s0  ;;  %v2032_v28 = vld [vmem:[#allocation6 + $0x38] sm:$0xff] }
 0x19c   :  { %1545 = vmatprep.mubr.msk.bf16.mxu0 %vm1838_vm0, %v1837_v3  ;;  %1537 = vmatprep.subr.bf16.mxu1 %v1837_v3 }
 0x19d   :  { %1555 = vmatprep.subr.bf16.mxu0 %v1837_v3 }
 0x1a2   :  { %1528 = vmatmul.mubr.msk.bf16.vlgmr.msra.gmra.mxu1 %vm168_vm3, %v1934_v14  ;;  %1546 = vmatmul.mubr.msk.bf16.vlgmr.msra.gmra.mxu0 %vm168_vm3, %v461_v20  ;;  %v2026_v20 = vld [vmem:[#allocation6 + $0x28] sm:$0xff] }
 0x1a3   :  { %1538 = vmatpush3.bf16.msra.mxu1 %v398_v30  ;;  %1539 = vmatprep.mubr.msk.bf16.mxu1 %vm1838_vm0, %v1837_v3  ;;  %v315_v22 = vmul.f32 %v2026_v20, %v229_v19  ;;  %v323_v30 = vmul.f32 %v2032_v28, %v241_v27 }
 0x1a4   :  { %1549 = vmatprep.subr.bf16.mxu1 %v1837_v3  ;;  %1557 = vmatprep.mubr.msk.bf16.mxu0 %vm1838_vm0, %v1837_v3 }
 0x1a5   :  { %v316_v25 = vadd.f32 %v315_v22, %v312_v21 }
 0x1a7   :  { %v320_v29 = vadd.f32 %v319_v26, %v316_v25 }
 0x1aa   :  { %1540 = vmatmul.mubr.msk.bf16.vlgmr.msra.gmra.mxu1 %vm168_vm3, %v393_v31  ;;  %v324_v31 = vadd.f32 %v323_v30, %v320_v29 }
 0x1ab   :  { %1551 = vmatprep.mubr.msk.bf16.mxu1 %vm1838_vm0, %v1837_v3 }
 0x252   :  { %v210_v38 = vpop.f32.mrf.mxu1 }
 0x254   :  { %v1523_v41 = vpop.f32.mrf.mxu1 }
 0x255   :  { %v230_v41 = vmul.f32 %v229_v19, %v1987_v35 }
 0x256   :  { %v213_v44 = vpop.f32.mrf.mxu1 }
 0x257   :  { %v2001_v45 = vpack.c.bf16 %v213_v44, %v210_v38  ;;  %v231_v44 = vadd.f32 %v230_v41, %v225_v40 }
 0x258   :  { %v1524_v48 = vpop.f32.mrf.mxu1 }
 0x259   :  { %v575_v51 = vsel %vm172_vm2, %v2001_v45, 0  ;;  %v237_v47 = vadd.f32 %v236_v46, %v231_v44  ;;  %v242_v48 = vmul.f32 %v241_v27, %v2006_v49  ;;  %v739_v23 = vrot.slane %v2001_v45, 4 }
 0x25a   :  { %v368_v52 = vpop.f32.mrf.mxu0  ;;  %1556 = vmatpush3.bf16.msra.mxu0 %v575_v51 }
 0x25b   :  { %1567 = vmatprep.subr.bf16.mxu0 %v1837_v3  ;;  %v369_v34 = vadd.f32 %v368_v52, %v324_v31  ;;  %v243_v51 = vadd.f32 %v242_v48, %v237_v47  ;;  %v744_v26 = vsel %vm172_vm2, %v739_v23, 0 }
 0x25c   :  { %v1535_v55 = vpop.f32.mrf.mxu0 }
 0x25d   :  { %v374_v38 = vsel %vm168_vm3, %v369_v34, -inf }
 0x25e   :  { %v371_v56 = vpop.f32.mrf.mxu0 }
 0x260   :  { %v1536_v58 = vpop.f32.mrf.mxu0 }
 0x262   :  { %v287_v59 = vpop.f32.mrf.mxu1  ;;  %v504_v60 = vpop.f32.mrf.mxu0 }
 0x263   :  { %v505_v61 = vadd.f32 %v504_v60, %v459_v57  ;;  %v288_v52 = vadd.f32 %v287_v59, %v243_v51 }
 0x264   :  { %v1529_v62 = vpop.f32.mrf.mxu1  ;;  %v1547_v63 = vpop.f32.mrf.mxu0 }
 0x265   :  { %v510_v0 = vsel %vm168_vm3, %v505_v61, -inf  ;;  %v293_v53 = vsel %vm168_vm3, %v288_v52, -inf }
 0x266   :  { %v290_v1 = vpop.f32.mrf.mxu1  ;;  %511 = vmax.xlane.f32.xlu0 %v510_v0  ;;  %v507_v2 = vpop.f32.mrf.mxu0 }
 0x268   :  { %v1530_v4 = vpop.f32.mrf.mxu1  ;;  %v1548_v5 = vpop.f32.mrf.mxu0 }
 0x26a   :  { %v434_v6 = vpop.f32.mrf.mxu1 }
 0x26c   :  { %v1541_v7 = vpop.f32.mrf.mxu1 }
 0x26e   :  { %v437_v8 = vpop.f32.mrf.mxu1 }
 0x26f   :  { %v2016_v9 = vpack.c.bf16 %v437_v8, %v434_v6 }
 0x270   :  { %v1542_v10 = vpop.f32.mrf.mxu1 }
 0x271   :  { %v529_v11 = vsel %vm172_vm2, %v2016_v9, 0 }
 0x272   :  { %1550 = vmatpush3.bf16.msra.mxu1 %v529_v11 }
 0x273   :  { %1561 = vmatprep.subr.bf16.mxu1 %v1837_v3 }
 0x27c   :  { %627 = vrot.lane.b32.xlu0 %v1940_v18, %s1842_s9  ;;  %s2167_s9 = sld [smem:[#allocation11 + $0x183]] }
 0x29b   :  { %375 = vmax.xlane.f32.xlu0 %v374_v38 }
 0x2b1   :  { %859 = vrot.lane.b32.xlu0 %v1934_v14, %s1844_s19 }
 0x2b5   :  { %979 = vrot.lane.b32.xlu0 %v1940_v18, %s1844_s19 }
 0x2d4   :  { %294 = vmax.xlane.f32.xlu0 %v293_v53  ;;  %v691_v53 = vrot.slane %v2016_v9, 4  ;;  %v619_v9 = vmul.f32 %v449_v37, %v2026_v20 }
 0x2ef   :  { %v512_v54 = vpop.xlane.xlu0 %511 }
 0x2f0   :  { %v513_v55 = vsub.f32 %v505_v61, %v512_v54 }
 0x2f2   :  { %v514_v56 = vmul.f32 1.442695, %v513_v55 }
 0x2f3   :  { %v628_v60 = vpop.permute.xlu0 %627 }
 0x2f4   :  { %1661 = vpow2.f32 %v514_v56  ;;  %v633_v22 = vsel %vm168_vm3, %v628_v60, 0  ;;  %v696_v56 = vsel %vm172_vm2, %v691_v53, 0 }
 0x301   :  { %v1662_v57 = vpop.eup %1661 }
 0x302   :  { %v516_v58 = vsel %vm168_vm3, %v1662_v57, 0.0 }
 0x303   :  { %517 = vadd.xlane.f32.xlu1 %v516_v58 }
 0x314   :  { %625 = vrot.lane.b32.xlu1 %v1940_v18, %s1839_s6  ;;  %s1458_s6 = sld [smem:[#allocation12 + $0x3]] }
 0x324   :  { %v376_v62 = vpop.xlane.xlu0 %375 }
 0x325   :  { %v377_v63 = vsub.f32 %v369_v34, %v376_v62  ;;  %v621_v62 = vmul.f32 %v453_v43, %v2029_v24  ;;  %v1092_v43 = vld [vmem:[#allocation9 + $0x18] sm:$0xff] }
 0x327   :  { %v378_v0 = vmul.f32 1.442695, %v377_v63 }
 0x328   :  { %v860_v61 = vpop.permute.xlu0 %859 }
 0x329   :  { %1663 = vpow2.f32 %v378_v0  ;;  %v865_v45 = vsel %vm168_vm3, %v860_v61, 0 }
 0x32c   :  { %v980_v2 = vpop.permute.xlu0 %979 }
 0x32d   :  { %v985_v41 = vsel %vm168_vm3, %v980_v2, 0 }
 0x336   :  { %v1664_v59 = vpop.eup %1663 }
 0x337   :  { %v380_v1 = vsel %vm168_vm3, %v1664_v59, 0.0 }
 0x338   :  { %381 = vadd.xlane.f32.xlu1 %v380_v1 }
 0x349   :  { %857 = vrot.lane.b32.xlu1 %v1934_v14, %s1845_s20 }
 0x34d   :  { %977 = vrot.lane.b32.xlu1 %v1940_v18, %s1845_s20 }
 0x35d   :  { %v295_v4 = vpop.xlane.xlu0 %294 }
 0x35e   :  { %v296_v5 = vsub.f32 %v288_v52, %v295_v4 }
 0x360   :  { %v297_v6 = vmul.f32 1.442695, %v296_v5 }
 0x362   :  { %1665 = vpow2.f32 %v297_v6 }
 0x36f   :  { %v1666_v7 = vpop.eup %1665 }
 0x370   :  { %v299_v8 = vsel %vm168_vm3, %v1666_v7, 0.0 }
 0x371   :  { %300 = vadd.xlane.f32.xlu0 %v299_v8 }
 0x38c   :  { %v518_v10 = vpop.xlane.xlu1 %517 }
 0x38d   :  { %1667 = vrcp.f32 %v518_v10 }
 0x390   :  { %v626_v25 = vpop.permute.xlu1 %625 }
 0x39a   :  { %v1668_v11 = vpop.eup %1667 }
 0x39b   :  { %v520_v12 = vmul.f32 %v1668_v11, %v518_v10 }
 0x39d   :  { %v521_v15 = vsub.f32 2.0, %v520_v12 }
 0x39f   :  { %v522_v16 = vmul.f32 %v1668_v11, %v521_v15 }
 0x3a1   :  { %v523_v19 = vmul.f32 %v1662_v57, %v522_v16  ;;  %v617_v57 = vmul.f32 %v444_v33, %v2023_v13 }
 0x3a3   :  { %v524_v21 = vpack.c.bf16 %v523_v19, %v523_v19  ;;  %v618_v58 = vadd.f32 %v617_v57, %v446_v36 }
 0x3a5   :  { %1552 = vmatmul.mubr.msk.bf16.vlgmr.msra.gmra.mxu1 %vm168_vm3, %v524_v21  ;;  %v620_v60 = vadd.f32 %v619_v9, %v618_v58 }
 0x3a6   :  { %1562 = vmatpush3.bf16.xpose.msra.mxu1 %v633_v22  ;;  %1563 = vmatprep.mubr.msk.bf16.mxu1 %vm1838_vm0, %v1837_v3 }
 0x3a7   :  { %1573 = vmatprep.subr.bf16.mxu1 %v1837_v3  ;;  %v622_v0 = vadd.f32 %v621_v62, %v620_v60 }
 0x3ad   :  { %1564 = vmatmul.mubr.msk.bf16.vlgmr.msra.gmra.mxu1 %vm168_vm3, %v626_v25 }
 0x3ae   :  { %1574 = vmatpush3.bf16.msra.mxu1 %v744_v26  ;;  %1575 = vmatprep.mubr.msk.bf16.mxu1 %vm1838_vm0, %v1837_v3 }
 0x3af   :  { %1585 = vmatprep.subr.bf16.mxu1 %v1837_v3 }
 0x3c1   :  { %v382_v27 = vpop.xlane.xlu1 %381 }
 0x3c2   :  { %1669 = vrcp.f32 %v382_v27 }
 0x3c5   :  { %v858_v40 = vpop.permute.xlu1 %857 }
 0x3c9   :  { %v978_v44 = vpop.permute.xlu1 %977 }
 0x3cf   :  { %v1670_v29 = vpop.eup %1669 }
 0x3d0   :  { %v384_v30 = vmul.f32 %v1670_v29, %v382_v27 }
 0x3d2   :  { %v385_v31 = vsub.f32 2.0, %v384_v30 }
 0x3d4   :  { %v386_v34 = vmul.f32 %v1670_v29, %v385_v31 }
 0x3d6   :  { %v387_v38 = vmul.f32 %v1664_v59, %v386_v34  ;;  %v623_v59 = vmul.f32 %v457_v50, %v2032_v28  ;;  %v1093_v50 = vpack.c.bf16 %v1092_v43, %v1092_v43 }
 0x3d8   :  { %v388_v39 = vpack.c.bf16 %v387_v38, %v387_v38  ;;  %v624_v2 = vadd.f32 %v623_v59, %v622_v0  ;;  %v1100_v8 = vsel %vm172_vm2, %v1093_v50, 0  ;;  %v843_v38 = vstv %s1448_s25 }
 0x3da   :  { %1576 = vmatmul.mubr.msk.bf16.vlgmr.msra.gmra.mxu1 %vm168_vm3, %v388_v39  ;;  %v846_v39 = vstv %s1450_s26 }
 0x3db   :  { %1586 = vmatpush3.bf16.xpose.msra.mxu1 %v865_v45  ;;  %1587 = vmatprep.mubr.msk.bf16.mxu1 %vm1838_vm0, %v1837_v3 }
 0x3dc   :  { %1597 = vmatprep.subr.bf16.mxu1 %v1837_v3 }
 0x3e2   :  { %1588 = vmatmul.mubr.msk.bf16.vlgmr.msra.gmra.mxu1 %vm168_vm3, %v858_v40 }
 0x3e3   :  { %1598 = vmatpush3.bf16.xpose.msra.mxu1 %v985_v41  ;;  %1599 = vmatprep.mubr.msk.bf16.mxu1 %vm1838_vm0, %v1837_v3 }
 0x3e4   :  { %1609 = vmatprep.subr.bf16.mxu1 %v1837_v3 }
 0x3ea   :  { %1600 = vmatmul.mubr.msk.bf16.vlgmr.msra.gmra.mxu1 %vm168_vm3, %v978_v44  ;;  %v847_v44 = vmul.f32 %v846_v39, %v1987_v35 }
 0x3eb   :  { %1611 = vmatprep.mubr.msk.bf16.mxu1 %vm1838_vm0, %v1837_v3  ;;  %1610 = vmatpush3.bf16.msra.mxu1 %v1100_v8 }
 0x3ec   :  { %1621 = vmatprep.subr.bf16.mxu1 %v1837_v3 }
 0x3fa   :  { %v301_v46 = vpop.xlane.xlu0 %300 }
 0x3fb   :  { %1671 = vrcp.f32 %v301_v46 }
 0x408   :  { %v1672_v47 = vpop.eup %1671 }
 0x409   :  { %v303_v48 = vmul.f32 %v1672_v47, %v301_v46 }
 0x40b   :  { %v304_v51 = vsub.f32 2.0, %v303_v48  ;;  %v850_v48 = vstv %s1451_s27 }
 0x40c   :  { %v851_v53 = vmul.f32 %v850_v48, %v1998_v42  ;;  %v973_v62 = vmul.f32 %v850_v48, %v2029_v24 }
 0x40d   :  { %v305_v52 = vmul.f32 %v1672_v47, %v304_v51 }
 0x40f   :  { %v306_v54 = vmul.f32 %v1666_v7, %v305_v52 }
 0x411   :  { %v307_v55 = vpack.c.bf16 %v306_v54, %v306_v54 }
 0x413   :  { %1558 = vmatmul.mubr.msk.bf16.vlgmr.msra.gmra.mxu0 %vm168_vm3, %v307_v55  ;;  %v971_v55 = vmul.f32 %v846_v39, %v2026_v20 }
 0x414   :  { %1568 = vmatpush3.bf16.msra.mxu0 %v696_v56  ;;  %1569 = vmatprep.mubr.msk.bf16.mxu0 %vm1838_vm0, %v1837_v3  ;;  %v854_v56 = vstv %s1452_s3 }
 0x415   :  { %1579 = vmatprep.subr.bf16.mxu0 %v1837_v3  ;;  %v855_v9 = vmul.f32 %v854_v56, %v2006_v49 }
 0x465   :  { %v2091_v63 = vpop.f32.mrf.mxu1 }
 0x467   :  { %v1553_v1 = vpop.f32.mrf.mxu1 }
 0x469   :  { %v568_v61 = vpop.f32.mrf.mxu1 }
 0x46a   :  { %v975_v61 = vmul.f32 %v854_v56, %v2032_v28 }
 0x46b   :  { %v1554_v4 = vpop.f32.mrf.mxu1 }
 0x46d   :  { %v669_v33 = vpop.f32.mrf.mxu1 }
 0x46e   :  { %v670_v5 = vadd.f32 %v669_v33, %v624_v2 }
 0x46f   :  { %v1565_v36 = vpop.f32.mrf.mxu1 }
 0x470   :  { %v675_v6 = vsel %vm168_vm3, %v670_v5, -inf }
 0x471   :  { %v672_v37 = vpop.f32.mrf.mxu1  ;;  %676 = vmax.xlane.f32.xlu1 %v675_v6 }
 0x473   :  { %v1566_v7 = vpop.f32.mrf.mxu1 }
 0x482   :  { %789 = vrot.lane.b32.xlu1 %v1938_v17, %s1846_s21 }
 0x486   :  { %1164 = vrot.lane.b32.xlu1 %v1934_v14, %s1847_s22 }
 0x48a   :  { %1284 = vrot.lane.b32.xlu1 %v1940_v18, %s1847_s22 }
 0x48e   :  { %1282 = vrot.lane.b32.xlu1 %v1940_v18, %s1848_s23 }
 0x492   :  { %1094 = vrot.lane.b32.xlu1 %v1938_v17, %s1849_s2  ;;  %v841_v17 = vstv %s1449_s24 }
 0x493   :  { %v842_v34 = vmul.f32 %v841_v17, %v1979_v32  ;;  %v969_v46 = vmul.f32 %v841_v17, %v2023_v13 }
 0x495   :  { %v844_v41 = vadd.f32 %v843_v38, %v842_v34  ;;  %v970_v54 = vadd.f32 %v969_v46, %v843_v38 }
 0x497   :  { %v848_v52 = vadd.f32 %v847_v44, %v844_v41  ;;  %v972_v60 = vadd.f32 %v971_v55, %v970_v54 }
 0x499   :  { %v852_v58 = vadd.f32 %v851_v53, %v848_v52  ;;  %v974_v1 = vadd.f32 %v973_v62, %v972_v60 }
 0x49a   :  { %v2105_v10 = vpop.f32.mrf.mxu1 }
 0x49b   :  { %v856_v59 = vadd.f32 %v855_v9, %v852_v58 }
 0x49c   :  { %v1577_v11 = vpop.f32.mrf.mxu1 }
 0x49e   :  { %v783_v12 = vpop.f32.mrf.mxu1 }
 0x4a0   :  { %v1578_v15 = vpop.f32.mrf.mxu1 }
 0x4a2   :  { %v901_v16 = vpop.f32.mrf.mxu1 }
 0x4a3   :  { %v902_v33 = vadd.f32 %v901_v16, %v856_v59 }
 0x4a4   :  { %v1589_v19 = vpop.f32.mrf.mxu1 }
 0x4a5   :  { %v907_v7 = vsel %vm168_vm3, %v902_v33, -inf }
 0x4a6   :  { %v904_v21 = vpop.f32.mrf.mxu1 }
 0x4a8   :  { %v1590_v22 = vpop.f32.mrf.mxu1 }
 0x4aa   :  { %v1021_v23 = vpop.f32.mrf.mxu1 }
 0x4ac   :  { %v1601_v25 = vpop.f32.mrf.mxu1 }
 0x4ad   :  { %v787_v25 = vld [vmem:[#allocation9 + $0x10] sm:$0xff] }
 0x4ae   :  { %v1024_v26 = vpop.f32.mrf.mxu1 }
 0x4b0   :  { %v1602_v27 = vpop.f32.mrf.mxu1 }
 0x4b1   :  { %v788_v27 = vpack.c.bf16 %v787_v25, %v787_v25 }
 0x4b3   :  { %v795_v34 = vsel %vm172_vm2, %v788_v27, 0 }
 0x4d3   :  { %v2107_v29 = vpop.f32.mrf.mxu0 }
 0x4d5   :  { %v1559_v18 = vpop.f32.mrf.mxu0 }
 0x4d7   :  { %v614_v30 = vpop.f32.mrf.mxu0 }
 0x4d9   :  { %v1560_v31 = vpop.f32.mrf.mxu0 }
 0x4fa   :  { %v677_v45 = vpop.xlane.xlu1 %676 }
 0x4fb   :  { %v678_v40 = vsub.f32 %v670_v5, %v677_v45  ;;  %v976_v5 = vadd.f32 %v975_v61, %v974_v1 }
 0x4fd   :  { %v679_v47 = vmul.f32 1.442695, %v678_v40  ;;  %v1022_v37 = vadd.f32 %v1021_v23, %v976_v5 }
 0x4fe   :  { %v790_v51 = vpop.permute.xlu1 %789 }
 0x4ff   :  { %1673 = vpow2.f32 %v679_v47  ;;  %v1027_v43 = vsel %vm168_vm3, %v1022_v37, -inf }
 0x502   :  { %v2114_v57 = vpop.permute.xlu1 %1164 }
 0x506   :  { %v2118_v0 = vpop.permute.xlu1 %1284 }
 0x50a   :  { %v2121_v2 = vpop.permute.xlu1 %1282 }
 0x50c   :  { %v1674_v4 = vpop.eup %1673 }
 0x50d   :  { %v681_v36 = vsel %vm168_vm3, %v1674_v4, 0.0 }
 0x50e   :  { %v1095_v6 = vpop.permute.xlu1 %1094  ;;  %682 = vadd.xlane.f32.xlu0 %v681_v36 }
 0x50f   :  { %1612 = vmatmul.mubr.msk.bf16.vlgmr.msra.gmra.mxu1 %vm168_vm3, %v1095_v6 }
 0x510   :  { %1623 = vmatprep.mubr.msk.bf16.mxu1 %vm1838_vm0, %v1837_v3 }
 0x512   :  { %908 = vmax.xlane.f32.xlu0 %v907_v7 }
 0x516   :  { %1028 = vmax.xlane.f32.xlu0 %v1027_v43 }
 0x597   :  { %v683_v50 = vpop.xlane.xlu0 %682 }
 0x598   :  { %1675 = vrcp.f32 %v683_v50 }
 0x59b   :  { %v909_v8 = vpop.xlane.xlu0 %908 }
 0x59c   :  { %v910_v11 = vsub.f32 %v902_v33, %v909_v8 }
 0x59e   :  { %v911_v12 = vmul.f32 1.442695, %v910_v11 }
 0x59f   :  { %v1029_v15 = vpop.xlane.xlu0 %1028 }
 0x5a0   :  { %1677 = vpow2.f32 %v911_v12  ;;  %v1030_v16 = vsub.f32 %v1022_v37, %v1029_v15  ;;  %v1170_v12 = vsel %vm168_vm3, %v2114_v57, 0  ;;  %v1146_v57 = vstv %s1459_s5 }
 0x5a2   :  { %v1031_v19 = vmul.f32 1.442695, %v1030_v16  ;;  %v1290_v16 = vsel %vm168_vm3, %v2118_v0, 0  ;;  %v1148_v0 = vstv %s1458_s6 }
 0x5a4   :  { %1679 = vpow2.f32 %v1031_v19  ;;  %v1147_v19 = vmul.f32 %v1146_v57, %v1979_v32 }
 0x5a5   :  { %v1676_v21 = vpop.eup %1675 }
 0x5a6   :  { %v685_v22 = vmul.f32 %v1676_v21, %v683_v50 }
 0x5a8   :  { %v686_v23 = vsub.f32 2.0, %v685_v22  ;;  %v612_v22 = vadd.f32 %v2107_v29, %v2091_v63 }
 0x5aa   :  { %v687_v26 = vmul.f32 %v1676_v21, %v686_v23  ;;  %v1151_v21 = vstv %s1460_s28 }
 0x5ac   :  { %v688_v18 = vmul.f32 %v1674_v4, %v687_v26  ;;  %v1149_v26 = vadd.f32 %v1148_v0, %v1147_v19 }
 0x5ad   :  { %v1678_v30 = vpop.eup %1677 }
 0x5ae   :  { %v689_v31 = vpack.c.bf16 %v688_v18, %v688_v18  ;;  %v913_v17 = vsel %vm168_vm3, %v1678_v30, 0.0  ;;  %v1155_v18 = vstv %s1461_s8 }
 0x5af   :  { %914 = vadd.xlane.f32.xlu0 %v913_v17  ;;  %v1156_v32 = vmul.f32 %v1155_v18, %v1998_v42  ;;  %v1159_v17 = vstv %s2167_s9  ;;  %v1278_v42 = vmul.f32 %v1155_v18, %v2029_v24 }
 0x5b0   :  { %1570 = vmatmul.mubr.msk.bf16.vlgmr.msra.gmra.mxu0 %vm168_vm3, %v689_v31  ;;  %v1160_v63 = vmul.f32 %v1159_v17, %v2006_v49 }
 0x5b1   :  { %v1680_v38 = vpop.eup %1679  ;;  %1580 = vmatpush3.bf16.msra.mxu0 %v795_v34  ;;  %1581 = vmatprep.mubr.msk.bf16.mxu0 %vm1838_vm0, %v1837_v3  ;;  %v1274_v34 = vmul.f32 %v1146_v57, %v2023_v13 }
 0x5b2   :  { %v1033_v39 = vsel %vm168_vm3, %v1680_v38, 0.0  ;;  %1591 = vmatprep.subr.bf16.mxu0 %v1837_v3 }
 0x5b3   :  { %1034 = vadd.xlane.f32.xlu0 %v1033_v39 }
 0x5b8   :  { %1582 = vmatmul.mubr.msk.bf16.vlgmr.msra.gmra.mxu0 %vm168_vm3, %v790_v51 }
 0x5b9   :  { %1593 = vmatprep.mubr.msk.bf16.mxu0 %vm1838_vm0, %v1837_v3 }
 0x5c9   :  { %1162 = vrot.lane.b32.xlu0 %v1934_v14, %s1848_s23 }
 0x5cf   :  { %v1136_v45 = vpop.f32.mrf.mxu1 }
 0x5d1   :  { %v1613_v40 = vpop.f32.mrf.mxu1 }
 0x5d3   :  { %v1139_v41 = vpop.f32.mrf.mxu1 }
 0x5d4   :  { %v2141_v44 = vpack.c.bf16 %v1139_v41, %v1136_v45  ;;  %v1275_v41 = vadd.f32 %v1274_v34, %v1148_v0 }
 0x5d5   :  { %v1614_v46 = vpop.f32.mrf.mxu1 }
 0x5d6   :  { %v1231_v47 = vsel %vm172_vm2, %v2141_v44, 0 }
 0x5d7   :  { %1622 = vmatpush3.bf16.msra.mxu1 %v1231_v47 }
 0x5d8   :  { %1633 = vmatprep.subr.bf16.mxu1 %v1837_v3 }
 0x638   :  { %v915_v48 = vpop.xlane.xlu0 %914 }
 0x639   :  { %1681 = vrcp.f32 %v915_v48 }
 0x63c   :  { %v1035_v51 = vpop.xlane.xlu0 %1034 }
 0x63d   :  { %1683 = vrcp.f32 %v1035_v51 }
 0x640   :  { %v1163_v15 = vpop.permute.xlu0 %1162 }
 0x646   :  { %v1682_v52 = vpop.eup %1681 }
 0x647   :  { %v917_v54 = vmul.f32 %v1682_v52, %v915_v48 }
 0x649   :  { %v918_v56 = vsub.f32 2.0, %v917_v54 }
 0x64a   :  { %v1684_v58 = vpop.eup %1683 }
 0x64b   :  { %v919_v62 = vmul.f32 %v1682_v52, %v918_v56  ;;  %v1037_v59 = vmul.f32 %v1684_v58, %v1035_v51 }
 0x64d   :  { %v920_v4 = vmul.f32 %v1678_v30, %v919_v62  ;;  %v1038_v33 = vsub.f32 2.0, %v1037_v59 }
 0x64f   :  { %v921_v7 = vpack.c.bf16 %v920_v4, %v920_v4  ;;  %v1039_v43 = vmul.f32 %v1684_v58, %v1038_v33 }
 0x651   :  { %v1040_v8 = vmul.f32 %v1680_v38, %v1039_v43 }
 0x653   :  { %v1041_v11 = vpack.c.bf16 %v1040_v8, %v1040_v8 }
 0x670   :  { %v732_v53 = vpop.f32.mrf.mxu0 }
 0x671   :  { %v781_v39 = vadd.f32 %v2105_v10, %v732_v53  ;;  %v1280_v10 = vmul.f32 %v1159_v17, %v2032_v28 }
 0x672   :  { %v1571_v14 = vpop.f32.mrf.mxu0 }
 0x674   :  { %v735_v55 = vpop.f32.mrf.mxu0 }
 0x676   :  { %v1572_v9 = vpop.f32.mrf.mxu0 }
 0x678   :  { %v831_v60 = vpop.f32.mrf.mxu0 }
 0x67a   :  { %v1583_v1 = vpop.f32.mrf.mxu0 }
 0x67c   :  { %v834_v61 = vpop.f32.mrf.mxu0 }
 0x67d   :  { %v838_v5 = vpack.c.bf16 %v834_v61, %v831_v60 }
 0x67e   :  { %v1584_v36 = vpop.f32.mrf.mxu0 }
 0x67f   :  { %v926_v6 = vsel %vm172_vm2, %v838_v5, 0  ;;  %v1043_v37 = vrot.slane %v838_v5, 4 }
 0x680   :  { %1592 = vmatpush3.bf16.msra.mxu0 %v926_v6 }
 0x681   :  { %1603 = vmatprep.subr.bf16.mxu0 %v1837_v3  ;;  %v1048_v50 = vsel %vm172_vm2, %v1043_v37, 0 }
 0x683   :  { %1594 = vmatmul.mubr.msk.bf16.vlgmr.msra.gmra.mxu0 %vm168_vm3, %v921_v7 }
 0x684   :  { %1604 = vmatpush3.bf16.msra.mxu0 %v1048_v50  ;;  %1605 = vmatprep.mubr.msk.bf16.mxu0 %vm1838_vm0, %v1837_v3 }
 0x685   :  { %1615 = vmatprep.subr.bf16.mxu0 %v1837_v3 }
 0x68b   :  { %1606 = vmatmul.mubr.msk.bf16.vlgmr.msra.gmra.mxu0 %vm168_vm3, %v1041_v11 }
 0x68c   :  { %1616 = vmatpush3.bf16.xpose.msra.mxu0 %v1170_v12  ;;  %1617 = vmatprep.mubr.msk.bf16.mxu0 %vm1838_vm0, %v1837_v3 }
 0x68d   :  { %1627 = vmatprep.subr.bf16.mxu0 %v1837_v3 }
 0x693   :  { %1618 = vmatmul.mubr.msk.bf16.vlgmr.msra.gmra.mxu0 %vm168_vm3, %v1163_v15 }
 0x694   :  { %1628 = vmatpush3.bf16.xpose.msra.mxu0 %v1290_v16  ;;  %1629 = vmatprep.mubr.msk.bf16.mxu0 %vm1838_vm0, %v1837_v3  ;;  %v1348_v16 = vrot.slane %v2141_v44, 4  ;;  %v1467_v44 = vld [vmem:[%s2211_s4] ss:$0 sm:$0xff]  ;;  %s1797_s4 = scalar_lea.vmem %s1413_s13, 256 }
 0x695   :  { %p1798_p2 = scmp.ne.s32.totalorder %s1413_s13, %s1797_s4  ;;  %p1803_p4 = scmp.lt.s32.totalorder %s1797_s4, %s1797_s4 }
 0x697   :  { %p1804_p5 = por %p1803_p4, %p1802_p3 }
 0x699   :  { %p1805_p6 = pnand %p1804_p5, %p1798_p2 }
 0x69b   :  { %1630 = vmatmul.mubr.msk.bf16.vlgmr.msra.gmra.mxu0 %vm168_vm3, %v2121_v2  ;;  %v1152_v2 = vmul.f32 %v1151_v21, %v1987_v35  ;;  %v1276_v35 = vmul.f32 %v1151_v21, %v2026_v20 }
 0x69d   :  { %v1153_v31 = vadd.f32 %v1152_v2, %v1149_v26  ;;  %v1277_v51 = vadd.f32 %v1276_v35, %v1275_v41 }
 0x69f   :  { %v1157_v40 = vadd.f32 %v1156_v32, %v1153_v31  ;;  %v1279_v14 = vadd.f32 %v1278_v42, %v1277_v51 }
 0x6a1   :  { %v1161_v48 = vadd.f32 %v1160_v63, %v1157_v40  ;;  %v1281_v56 = vadd.f32 %v1280_v10, %v1279_v14 }
 0x743   :  { %v962_v25 = vpop.f32.mrf.mxu0 }
 0x744   :  { %v2171_v23 = vadd.f32 %v962_v25, %v612_v22  ;;  %v1353_v25 = vsel %vm172_vm2, %v1348_v16, 0 }
 0x745   :  { %v1595_v27 = vpop.f32.mrf.mxu0 }
 0x747   :  { %v965_v30 = vpop.f32.mrf.mxu0 }
 0x749   :  { %v1596_v38 = vpop.f32.mrf.mxu0 }
 0x74b   :  { %v1084_v45 = vpop.f32.mrf.mxu0 }
 0x74c   :  { %v2179_v29 = vadd.f32 %v1084_v45, %v781_v39 }
 0x74d   :  { %v1607_v46 = vpop.f32.mrf.mxu0 }
 0x74f   :  { %v1087_v47 = vpop.f32.mrf.mxu0 }
 0x751   :  { %v1608_v52 = vpop.f32.mrf.mxu0 }
 0x753   :  { %v1206_v13 = vpop.f32.mrf.mxu0 }
 0x754   :  { %v1207_v54 = vadd.f32 %v1206_v13, %v1161_v48 }
 0x755   :  { %v1619_v53 = vpop.f32.mrf.mxu0 }
 0x756   :  { %v1212_v49 = vsel %vm168_vm3, %v1207_v54, -inf }
 0x757   :  { %1213 = vmax.xlane.f32.xlu1 %v1212_v49  ;;  %v1209_v55 = vpop.f32.mrf.mxu0 }
 0x759   :  { %v1620_v58 = vpop.f32.mrf.mxu0 }
 0x75b   :  { %v1326_v20 = vpop.f32.mrf.mxu0 }
 0x75c   :  { %v1327_v9 = vadd.f32 %v1326_v20, %v1281_v56 }
 0x75d   :  { %v1631_v60 = vpop.f32.mrf.mxu0 }
 0x75e   :  { %v1332_v62 = vsel %vm168_vm3, %v1327_v9, -inf }
 0x75f   :  { %1333 = vmax.xlane.f32.xlu0 %v1332_v62  ;;  %v1329_v24 = vpop.f32.mrf.mxu0 }
 0x761   :  { %v1632_v59 = vpop.f32.mrf.mxu0 }
 0x7e0   :  { %v1214_v1 = vpop.xlane.xlu1 %1213 }
 0x7e1   :  { %v1215_v61 = vsub.f32 %v1207_v54, %v1214_v1 }
 0x7e3   :  { %v1216_v4 = vmul.f32 1.442695, %v1215_v61 }
 0x7e5   :  { %1685 = vpow2.f32 %v1216_v4 }
 0x7e8   :  { %v1334_v28 = vpop.xlane.xlu0 %1333 }
 0x7e9   :  { %v1335_v33 = vsub.f32 %v1327_v9, %v1334_v28 }
 0x7eb   :  { %v1336_v5 = vmul.f32 1.442695, %v1335_v33 }
 0x7ed   :  { %1687 = vpow2.f32 %v1336_v5 }
 0x7f2   :  { %v1686_v36 = vpop.eup %1685 }
 0x7f3   :  { %v1218_v6 = vsel %vm168_vm3, %v1686_v36, 0.0 }
 0x7f4   :  { %1219 = vadd.xlane.f32.xlu1 %v1218_v6 }
 0x7fa   :  { %v1688_v37 = vpop.eup %1687 }
 0x7fb   :  { %v1338_v7 = vsel %vm168_vm3, %v1688_v37, 0.0 }
 0x7fc   :  { %1339 = vadd.xlane.f32.xlu0 %v1338_v7 }
 0x87d   :  { %v1220_v43 = vpop.xlane.xlu1 %1219 }
 0x87e   :  { %1689 = vrcp.f32 %v1220_v43 }
 0x885   :  { %v1340_v50 = vpop.xlane.xlu0 %1339 }
 0x886   :  { %1691 = vrcp.f32 %v1340_v50 }
 0x88b   :  { %v1690_v8 = vpop.eup %1689 }
 0x88c   :  { %v1222_v11 = vmul.f32 %v1690_v8, %v1220_v43 }
 0x88e   :  { %v1223_v12 = vsub.f32 2.0, %v1222_v11 }
 0x890   :  { %v1224_v15 = vmul.f32 %v1690_v8, %v1223_v12 }
 0x892   :  { %v1225_v57 = vmul.f32 %v1686_v36, %v1224_v15 }
 0x893   :  { %v1692_v19 = vpop.eup %1691 }
 0x894   :  { %v1226_v0 = vpack.c.bf16 %v1225_v57, %v1225_v57  ;;  %v1342_v21 = vmul.f32 %v1692_v19, %v1340_v50 }
 0x896   :  { %v1343_v22 = vsub.f32 2.0, %v1342_v21  ;;  %1624 = vmatmul.mubr.msk.bf16.vlgmr.msra.gmra.mxu1 %vm168_vm3, %v1226_v0 }
 0x897   :  { %1634 = vmatpush3.bf16.msra.mxu1 %v1353_v25  ;;  %1635 = vmatprep.mubr.msk.bf16.mxu1 %vm1838_vm0, %v1837_v3 }
 0x898   :  { %v1344_v26 = vmul.f32 %v1692_v19, %v1343_v22 }
 0x89a   :  { %v1345_v2 = vmul.f32 %v1688_v37, %v1344_v26 }
 0x89c   :  { %v1346_v27 = vpack.c.bf16 %v1345_v2, %v1345_v2 }
 0x89e   :  { %1636 = vmatmul.mubr.msk.bf16.vlgmr.msra.gmra.mxu1 %vm168_vm3, %v1346_v27 }
 0x956   :  { %v1267_v18 = vpop.f32.mrf.mxu1 }
 0x957   :  { %v1273_v30 = vadd.f32 %v1267_v18, %v2171_v23 }
 0x958   :  { %v1625_v31 = vpop.f32.mrf.mxu1 }
 0x959   :  { %v1403_v32 = vadd.f32 %v1467_v44, %v1273_v30 }
 0x95a   :  { %v1270_v17 = vpop.f32.mrf.mxu1 }
 0x95b   :  { %1405 = vst.msk [vmem:[#allocation14] sm:$0xff] %vm117_vm1, %v1403_v32 }
 0x95c   :  { %v1626_v34 = vpop.f32.mrf.mxu1 }
 0x95e   :  { %v1389_v38 = vpop.f32.mrf.mxu1 }
 0x95f   :  { %v1395_v3 = vadd.f32 %v1389_v38, %v2179_v29 }
 0x960   :  { %v1637_v39 = vpop.f32.mrf.mxu1 }
 0x961   :  { %v1404_v45 = vadd.f32 %v1467_v44, %v1395_v3 }
 0x962   :  { %v1392_v63 = vpop.f32.mrf.mxu1 }
 0x963   :  { %1406 = vst.msk [vmem:[#allocation14 + $0x8] sm:$0xff] %vm117_vm1, %v1404_v45 }
 0x964   :  { %v1638_v40 = vpop.f32.mrf.mxu1 }
 0x965   :  { %1808 = shalt.err (!%p1805_p6)
}
 0x966   :  { %1418 = dma.vmem_to_hbm [thread:$0]  %s1413_s13, 256, %s2214_s7, [#allocation4], %s1831_s29, %s1831_s29, %s1832_s30  }
 0x967   :  { %1827 = dma.done.wait [#allocation4], 256  }
 0x968   :  { %1828 = vsyncadd [#allocation4], 4294967040 }
 0x969   :  { %1422 = vsyncpa [#allocation3], 1 }
 0x96a   :  { %1423 = vsyncpa [#allocation7], 1 }
 0x96b   :  { %1424 = vsyncpa [#allocation10], 1 }
 0x96c   :  { %1425 = vsyncpa [#allocation4], 1 }
 0x96d   :  { %1426 = vsyncpa [#allocation5], 1 }
 0x96e   :  { %1427 = vsyncpa [#allocation13], 1 }

</bundles_post_ra>
